<compile_context>
chip_gen: v6e
topology: v6e:2x2x1
jax: 0.10.0
libtpu: 0.0.40
codegen_flags: <defaults>
</compile_context>

<pallas_src>
import jax
import jax.numpy as jnp
from jax.experimental import pallas as pl
from jax.experimental.pallas import tpu as pltpu

D_IN = 784          # 28*28, kept un-padded (full-dim blocks are legal)
H, H_PAD = 400, 512 # hidden dim padded to 4*128
Z, Z_PAD = 20, 128  # latent dim padded to one lane group (internally only)


def _round_up(x, m):
    return ((x + m - 1) // m) * m


def _tiling(B, tm_max=512):
    """Pick (tm, B_pad): large tiles, >= 2 grid steps when B > 16 (v7x megacore)."""
    if B <= 16:
        tm = _round_up(max(B, 1), 8)
        return tm, tm
    n = max(2, -(-B // tm_max))          # number of grid steps
    tm = _round_up(-(-B // n), 8)        # <= tm_max, multiple of 8
    return tm, tm * n


def vae_kernel(x_ref, eps_ref,
               w1_ref, b1_ref,
               wm_ref, bm_ref,
               w3_ref, b3_ref,
               w4_ref, b4_ref,
               recon_ref, mu_ref, logvar_ref):
    # --- encode: h1 = relu(x @ W1 + b1) ---  (x cast to bf16 in-kernel)
    h1 = jnp.dot(x_ref[...].astype(jnp.bfloat16), w1_ref[...],
                 preferred_element_type=jnp.float32) + b1_ref[...]
    h1 = jnp.maximum(h1, 0.0)

    # --- fused mu/logvar head: one MXU pass, lane-dense (tm, 256) intermediate ---
    mulv = jnp.dot(h1.astype(jnp.bfloat16), wm_ref[...],
                   preferred_element_type=jnp.float32) + bm_ref[...]
    mu_blk = mulv[:, :Z_PAD]      # real mu in lanes [0, 20)
    lv_blk = mulv[:, Z_PAD:]      # real logvar in lanes [0, 20) of the 2nd block

    # --- reparameterize (f32): padded lanes have mu=0, logvar=0 -> std=1, eps=0 ---
    z = eps_ref[...] * jnp.exp(0.5 * lv_blk) + mu_blk

    # --- decode ---
    h3 = jnp.dot(z.astype(jnp.bfloat16), w3_ref[...],
                 preferred_element_type=jnp.float32) + b3_ref[...]
    h3 = jnp.maximum(h3, 0.0)

    logits = jnp.dot(h3.astype(jnp.bfloat16), w4_ref[...],
                     preferred_element_type=jnp.float32) + b4_ref[...]

    # sigmoid: exp + approx reciprocal both run on the EUP (free bundle slot);
    # clamp so the approx reciprocal can never push a probability outside [0, 1].
    recon = pl.reciprocal(1.0 + jnp.exp(-logits), approx=True)
    recon = jnp.clip(recon, 0.0, 1.0)
    recon_ref[...] = recon.astype(recon_ref.dtype)

    # narrow writebacks: only the 20 real lanes of each head hit HBM
    mu_ref[...] = mu_blk[:, :Z]
    logvar_ref[...] = lv_blk[:, :Z]


def init_params(key):
    """nn.Linear-style init (uniform(+/- 1/sqrt(fan_in))). Weights stored (in, out)."""
    def linear(k, fan_in, fan_out):
        kw, kb = jax.random.split(k)
        bound = 1.0 / jnp.sqrt(jnp.float32(fan_in))
        w = jax.random.uniform(kw, (fan_in, fan_out), jnp.float32, -bound, bound)
        b = jax.random.uniform(kb, (1, fan_out), jnp.float32, -bound, bound)
        return w, b

    k1, k2, k3, k4, k5 = jax.random.split(key, 5)
    w1, b1 = linear(k1, 784, 400)    # fc1
    w21, b21 = linear(k2, 400, 20)   # fc21 (mu head)
    w22, b22 = linear(k3, 400, 20)   # fc22 (logvar head)
    w3, b3 = linear(k4, 20, 400)     # fc3
    w4, b4 = linear(k5, 400, 784)    # fc4
    return (w1, b1, w21, b21, w22, b22, w3, b3, w4, b4)


def prepare_params(params):
    """One-time transform: pad hidden/latent dims to lane multiples, fuse the
    mu/logvar heads, cast weights to bf16 (biases stay f32).  The 784 input/output
    feature dim is deliberately left un-padded."""
    (w1, b1, w21, b21, w22, b22, w3, b3, w4, b4) = params

    def pad_cols(a, c):
        return jnp.pad(a, ((0, 0), (0, c - a.shape[1])))

    def pad_rc(a, r, c):
        return jnp.pad(a, ((0, r - a.shape[0]), (0, c - a.shape[1])))

    w1p = pad_cols(w1, H_PAD).astype(jnp.bfloat16)            # (784, 512)
    b1p = pad_cols(b1, H_PAD)                                 # (1, 512)
    wm = jnp.concatenate([pad_rc(w21, H_PAD, Z_PAD),
                          pad_rc(w22, H_PAD, Z_PAD)],
                         axis=1).astype(jnp.bfloat16)         # (512, 256): [mu | logvar]
    bm = jnp.concatenate([pad_cols(b21, Z_PAD),
                          pad_cols(b22, Z_PAD)], axis=1)      # (1, 256)
    w3p = pad_rc(w3, Z_PAD, H_PAD).astype(jnp.bfloat16)       # (128, 512)
    b3p = pad_cols(b3, H_PAD)                                 # (1, 512)
    w4p = pad_rc(w4, H_PAD, D_IN).astype(jnp.bfloat16)        # (512, 784)
    b4p = b4                                                  # (1, 784)
    return (w1p, b1p, wm, bm, w3p, b3p, w4p, b4p)


def vae_forward(x, eps, prep):
    """x: (B, 1, 28, 28) or (B, 784) float32; eps: (B, 20) float32.
    Returns (recon bf16 (B,784), mu f32 (B,20), logvar f32 (B,20))."""
    B = x.shape[0]
    x2d = x.reshape(B, D_IN).astype(jnp.float32)

    tm, B_pad = _tiling(B)
    if B_pad != B:
        x2d = jnp.pad(x2d, ((0, B_pad - B), (0, 0)))
    # eps is tiny (20 lanes); pad it to one lane group with zeros.
    eps_pad = jnp.zeros((B_pad, Z_PAD), jnp.float32).at[:B, :Z].set(eps)

    (w1p, b1p, wm, bm, w3p, b3p, w4p, b4p) = prep

    flops = 2 * B_pad * (D_IN * H + 2 * H * Z + Z * H + H * D_IN)
    bytes_accessed = (
        B_pad * D_IN * 4 + B_pad * Z_PAD * 4                              # x, eps
        + 2 * (D_IN * H_PAD + H_PAD * 2 * Z_PAD + Z_PAD * H_PAD + H_PAD * D_IN)  # bf16 W
        + 4 * (H_PAD + 2 * Z_PAD + H_PAD + D_IN)                          # f32 biases
        + B_pad * D_IN * 2 + 2 * B_pad * Z * 4)                           # recon, mu, lv

    recon, mu, logvar = pl.pallas_call(
        vae_kernel,
        out_shape=(
            jax.ShapeDtypeStruct((B_pad, D_IN), jnp.bfloat16),
            jax.ShapeDtypeStruct((B_pad, Z), jnp.float32),
            jax.ShapeDtypeStruct((B_pad, Z), jnp.float32),
        ),
        grid_spec=pltpu.PrefetchScalarGridSpec(
            num_scalar_prefetch=0,
            grid=(B_pad // tm,),
            in_specs=[
                pl.BlockSpec((tm, D_IN), lambda i: (i, 0)),           # x tile (f32)
                pl.BlockSpec((tm, Z_PAD), lambda i: (i, 0)),          # eps tile
                pl.BlockSpec((D_IN, H_PAD), lambda i: (0, 0)),        # w1 (resident)
                pl.BlockSpec((1, H_PAD), lambda i: (0, 0)),           # b1
                pl.BlockSpec((H_PAD, 2 * Z_PAD), lambda i: (0, 0)),   # fused mu/logvar W
                pl.BlockSpec((1, 2 * Z_PAD), lambda i: (0, 0)),       # fused b
                pl.BlockSpec((Z_PAD, H_PAD), lambda i: (0, 0)),       # w3
                pl.BlockSpec((1, H_PAD), lambda i: (0, 0)),           # b3
                pl.BlockSpec((H_PAD, D_IN), lambda i: (0, 0)),        # w4
                pl.BlockSpec((1, D_IN), lambda i: (0, 0)),            # b4
            ],
            out_specs=(
                pl.BlockSpec((tm, D_IN), lambda i: (i, 0)),           # recon (784, bf16)
                pl.BlockSpec((tm, Z), lambda i: (i, 0)),              # mu (20 lanes)
                pl.BlockSpec((tm, Z), lambda i: (i, 0)),              # logvar (20 lanes)
            ),
        ),
        compiler_params=pltpu.CompilerParams(
            dimension_semantics=("parallel",),
            vmem_limit_bytes=32 * 1024 * 1024),
        cost_estimate=pl.CostEstimate(
            flops=flops,
            transcendentals=B_pad * (Z + D_IN),
            bytes_accessed=bytes_accessed),
    )(x2d, eps_pad, w1p, b1p, wm, bm, w3p, b3p, w4p, b4p)

    if B_pad != B:  # only slice the batch dim, and only if it was padded
        recon, mu, logvar = recon[:B], mu[:B], logvar[:B]
    return recon, mu, logvar


if __name__ == "__main__":
    key = jax.random.PRNGKey(0)
    k_params, k_x, k_eps = jax.random.split(key, 3)

    params = init_params(k_params)
    prep = prepare_params(params)   # one-time weight prep (pad/fuse/bf16)

    B = 8
    x = jax.random.uniform(k_x, (B, 1, 28, 28), jnp.float32)   # NCHW MNIST-like input
    # torch.randn_like(std) -> noise generated outside the kernel for determinism
    eps = jax.random.normal(k_eps, (B, Z), jnp.float32)

    recon, mu, logvar = jax.jit(vae_forward)(x, eps, prep)
    jax.block_until_ready((recon, mu, logvar))

    # Pure-JAX reference mirroring the kernel arithmetic (bf16 matmul operands,
    # f32 accumulation and f32 elementwise).
    (w1, b1, w21, b21, w22, b22, w3, b3, w4, b4) = params
    x2d = x.reshape(B, D_IN)

    def mm(a, w):
        return jnp.dot(a.astype(jnp.bfloat16), w.astype(jnp.bfloat16),
                       preferred_element_type=jnp.float32)

    h1 = jnp.maximum(mm(x2d, w1) + b1, 0.0)
    mu_ref = mm(h1, w21) + b21
    lv_ref = mm(h1, w22) + b22
    z_ref = eps * jnp.exp(0.5 * lv_ref) + mu_ref
    h3 = jnp.maximum(mm(z_ref, w3) + b3, 0.0)
    recon_ref = jax.nn.sigmoid(mm(h3, w4) + b4)

    assert recon.shape == (B, 784) and mu.shape == (B, 20) and logvar.shape == (B, 20)
    assert jnp.allclose(mu, mu_ref, atol=2e-3, rtol=2e-3)
    assert jnp.allclose(logvar, lv_ref, atol=2e-3, rtol=2e-3)
    # recon tolerance loosened for bf16 output + the approx (EUP) reciprocal sigmoid
    assert jnp.allclose(recon.astype(jnp.float32), recon_ref, atol=2e-2, rtol=2e-2)

    print("KERNEL_OK")
</pallas_src>

<mosaic_0001>
module attributes {stable_mosaic.version = 11 : i64} {
  func.func @vae_kernel(%arg0: i32, %arg1: memref<8x784xf32, #tpu.memory_space<vmem>>, %arg2: memref<8x128xf32, #tpu.memory_space<vmem>>, %arg3: memref<784x512xbf16, #tpu.memory_space<vmem>>, %arg4: memref<1x512xf32, #tpu.memory_space<vmem>>, %arg5: memref<512x256xbf16, #tpu.memory_space<vmem>>, %arg6: memref<1x256xf32, #tpu.memory_space<vmem>>, %arg7: memref<128x512xbf16, #tpu.memory_space<vmem>>, %arg8: memref<1x512xf32, #tpu.memory_space<vmem>>, %arg9: memref<512x784xbf16, #tpu.memory_space<vmem>>, %arg10: memref<1x784xf32, #tpu.memory_space<vmem>>, %arg11: memref<8x784xbf16, #tpu.memory_space<vmem>>, %arg12: memref<8x20xf32, #tpu.memory_space<vmem>>, %arg13: memref<8x20xf32, #tpu.memory_space<vmem>>) attributes {dimension_semantics = [#tpu.dimension_semantics<parallel>], iteration_bounds = array<i64: 1>, scalar_prefetch = 0 : i64, scratch_operands = 0 : i64, tpu.core_type = #tpu.core_type<tc>, window_params = [{transform_indices = @transform_0, window_bounds = array<i64: 8, 784>}, {transform_indices = @transform_1, window_bounds = array<i64: 8, 128>}, {pipeline_mode = #tpu.pipeline_mode<synchronous>, transform_indices = @transform_2, window_bounds = array<i64: 784, 512>}, {pipeline_mode = #tpu.pipeline_mode<synchronous>, transform_indices = @transform_3, window_bounds = array<i64: 1, 512>}, {pipeline_mode = #tpu.pipeline_mode<synchronous>, transform_indices = @transform_4, window_bounds = array<i64: 512, 256>}, {pipeline_mode = #tpu.pipeline_mode<synchronous>, transform_indices = @transform_5, window_bounds = array<i64: 1, 256>}, {pipeline_mode = #tpu.pipeline_mode<synchronous>, transform_indices = @transform_6, window_bounds = array<i64: 128, 512>}, {pipeline_mode = #tpu.pipeline_mode<synchronous>, transform_indices = @transform_7, window_bounds = array<i64: 1, 512>}, {pipeline_mode = #tpu.pipeline_mode<synchronous>, transform_indices = @transform_8, window_bounds = array<i64: 512, 784>}, {pipeline_mode = #tpu.pipeline_mode<synchronous>, transform_indices = @transform_9, window_bounds = array<i64: 1, 784>}, {transform_indices = @transform_10, window_bounds = array<i64: 8, 784>}, {transform_indices = @transform_11, window_bounds = array<i64: 8, 20>}, {transform_indices = @transform_12, window_bounds = array<i64: 8, 20>}]} {
    %c0 = arith.constant 0 : index
    %c0_0 = arith.constant 0 : index
    %0 = vector.load %arg1[%c0, %c0_0] : memref<8x784xf32, #tpu.memory_space<vmem>>, vector<8x784xf32>
    %1 = arith.truncf %0 : vector<8x784xf32> to vector<8x784xbf16>
    %c0_1 = arith.constant 0 : index
    %c0_2 = arith.constant 0 : index
    %2 = vector.load %arg3[%c0_1, %c0_2] : memref<784x512xbf16, #tpu.memory_space<vmem>>, vector<784x512xbf16>
    %cst = arith.constant dense<0.000000e+00> : vector<8x512xf32>
    %3 = tpu.matmul %1, %2, %cst {dimension_numbers = #tpu.dot_dimension_numbers<[1], [0], [0], [1], [0, 0, 1, 1], [], []>} : vector<8x784xbf16>, vector<784x512xbf16>, vector<8x512xf32> -> vector<8x512xf32>
    %c0_3 = arith.constant 0 : index
    %c0_4 = arith.constant 0 : index
    %4 = vector.load %arg4[%c0_3, %c0_4] : memref<1x512xf32, #tpu.memory_space<vmem>>, vector<1x512xf32>
    %5 = vector.broadcast %4 : vector<1x512xf32> to vector<8x512xf32>
    %6 = arith.addf %3, %5 : vector<8x512xf32>
    %cst_5 = arith.constant 0.000000e+00 : f32
    %7 = vector.broadcast %cst_5 : f32 to vector<8x512xf32>
    %8 = arith.maximumf %6, %7 : vector<8x512xf32>
    %9 = arith.truncf %8 : vector<8x512xf32> to vector<8x512xbf16>
    %c0_6 = arith.constant 0 : index
    %c0_7 = arith.constant 0 : index
    %10 = vector.load %arg5[%c0_6, %c0_7] : memref<512x256xbf16, #tpu.memory_space<vmem>>, vector<512x256xbf16>
    %cst_8 = arith.constant dense<0.000000e+00> : vector<8x256xf32>
    %11 = tpu.matmul %9, %10, %cst_8 {dimension_numbers = #tpu.dot_dimension_numbers<[1], [0], [0], [1], [0, 0, 1, 1], [], []>} : vector<8x512xbf16>, vector<512x256xbf16>, vector<8x256xf32> -> vector<8x256xf32>
    %c0_9 = arith.constant 0 : index
    %c0_10 = arith.constant 0 : index
    %12 = vector.load %arg6[%c0_9, %c0_10] : memref<1x256xf32, #tpu.memory_space<vmem>>, vector<1x256xf32>
    %13 = vector.broadcast %12 : vector<1x256xf32> to vector<8x256xf32>
    %14 = arith.addf %11, %13 : vector<8x256xf32>
    %15 = vector.extract_strided_slice %14 {offsets = [0, 0], sizes = [8, 128], strides = [1, 1]} : vector<8x256xf32> to vector<8x128xf32>
    %16 = vector.extract_strided_slice %14 {offsets = [0, 128], sizes = [8, 128], strides = [1, 1]} : vector<8x256xf32> to vector<8x128xf32>
    %c0_11 = arith.constant 0 : index
    %c0_12 = arith.constant 0 : index
    %17 = vector.load %arg2[%c0_11, %c0_12] : memref<8x128xf32, #tpu.memory_space<vmem>>, vector<8x128xf32>
    %cst_13 = arith.constant 5.000000e-01 : f32
    %18 = vector.broadcast %cst_13 : f32 to vector<8x128xf32>
    %19 = arith.mulf %18, %16 : vector<8x128xf32>
    %20 = math.exp %19 : vector<8x128xf32>
    %21 = arith.mulf %17, %20 : vector<8x128xf32>
    %22 = arith.addf %21, %15 : vector<8x128xf32>
    %23 = arith.truncf %22 : vector<8x128xf32> to vector<8x128xbf16>
    %c0_14 = arith.constant 0 : index
    %c0_15 = arith.constant 0 : index
    %24 = vector.load %arg7[%c0_14, %c0_15] : memref<128x512xbf16, #tpu.memory_space<vmem>>, vector<128x512xbf16>
    %cst_16 = arith.constant dense<0.000000e+00> : vector<8x512xf32>
    %25 = tpu.matmul %23, %24, %cst_16 {dimension_numbers = #tpu.dot_dimension_numbers<[1], [0], [0], [1], [0, 0, 1, 1], [], []>} : vector<8x128xbf16>, vector<128x512xbf16>, vector<8x512xf32> -> vector<8x512xf32>
    %c0_17 = arith.constant 0 : index
    %c0_18 = arith.constant 0 : index
    %26 = vector.load %arg8[%c0_17, %c0_18] : memref<1x512xf32, #tpu.memory_space<vmem>>, vector<1x512xf32>
    %27 = vector.broadcast %26 : vector<1x512xf32> to vector<8x512xf32>
    %28 = arith.addf %25, %27 : vector<8x512xf32>
    %cst_19 = arith.constant 0.000000e+00 : f32
    %29 = vector.broadcast %cst_19 : f32 to vector<8x512xf32>
    %30 = arith.maximumf %28, %29 : vector<8x512xf32>
    %31 = arith.truncf %30 : vector<8x512xf32> to vector<8x512xbf16>
    %c0_20 = arith.constant 0 : index
    %c0_21 = arith.constant 0 : index
    %32 = vector.load %arg9[%c0_20, %c0_21] : memref<512x784xbf16, #tpu.memory_space<vmem>>, vector<512x784xbf16>
    %cst_22 = arith.constant dense<0.000000e+00> : vector<8x784xf32>
    %33 = tpu.matmul %31, %32, %cst_22 {dimension_numbers = #tpu.dot_dimension_numbers<[1], [0], [0], [1], [0, 0, 1, 1], [], []>} : vector<8x512xbf16>, vector<512x784xbf16>, vector<8x784xf32> -> vector<8x784xf32>
    %c0_23 = arith.constant 0 : index
    %c0_24 = arith.constant 0 : index
    %34 = vector.load %arg10[%c0_23, %c0_24] : memref<1x784xf32, #tpu.memory_space<vmem>>, vector<1x784xf32>
    %35 = vector.broadcast %34 : vector<1x784xf32> to vector<8x784xf32>
    %36 = arith.addf %33, %35 : vector<8x784xf32>
    %cst_25 = arith.constant 0.000000e+00 : f32
    %37 = vector.broadcast %cst_25 : f32 to vector<8x784xf32>
    %38 = arith.subf %37, %36 : vector<8x784xf32>
    %39 = math.exp %38 : vector<8x784xf32>
    %cst_26 = arith.constant 1.000000e+00 : f32
    %40 = vector.broadcast %cst_26 : f32 to vector<8x784xf32>
    %41 = arith.addf %40, %39 : vector<8x784xf32>
    %42 = tpu.reciprocal %41 {approx = true} : vector<8x784xf32> -> vector<8x784xf32>
    %cst_27 = arith.constant 0.000000e+00 : f32
    %cst_28 = arith.constant 1.000000e+00 : f32
    %43 = vector.broadcast %cst_27 : f32 to vector<8x784xf32>
    %44 = arith.maximumf %43, %42 : vector<8x784xf32>
    %45 = vector.broadcast %cst_28 : f32 to vector<8x784xf32>
    %46 = arith.minimumf %45, %44 : vector<8x784xf32>
    %47 = arith.truncf %46 : vector<8x784xf32> to vector<8x784xbf16>
    %c0_29 = arith.constant 0 : index
    %c0_30 = arith.constant 0 : index
    %48 = vector.load %arg11[%c0_29, %c0_30] : memref<8x784xbf16, #tpu.memory_space<vmem>>, vector<8x784xbf16>
    tpu.vector_store %arg11[%c0_29, %c0_30], %47 {strides = array<i32>} : memref<8x784xbf16, #tpu.memory_space<vmem>>, vector<8x784xbf16>,
    %49 = vector.extract_strided_slice %15 {offsets = [0, 0], sizes = [8, 20], strides = [1, 1]} : vector<8x128xf32> to vector<8x20xf32>
    %c0_31 = arith.constant 0 : index
    %c0_32 = arith.constant 0 : index
    %50 = vector.load %arg12[%c0_31, %c0_32] : memref<8x20xf32, #tpu.memory_space<vmem>>, vector<8x20xf32>
    tpu.vector_store %arg12[%c0_31, %c0_32], %49 {strides = array<i32>} : memref<8x20xf32, #tpu.memory_space<vmem>>, vector<8x20xf32>,
    %51 = vector.extract_strided_slice %16 {offsets = [0, 0], sizes = [8, 20], strides = [1, 1]} : vector<8x128xf32> to vector<8x20xf32>
    %c0_33 = arith.constant 0 : index
    %c0_34 = arith.constant 0 : index
    %52 = vector.load %arg13[%c0_33, %c0_34] : memref<8x20xf32, #tpu.memory_space<vmem>>, vector<8x20xf32>
    tpu.vector_store %arg13[%c0_33, %c0_34], %51 {strides = array<i32>} : memref<8x20xf32, #tpu.memory_space<vmem>>, vector<8x20xf32>,
    return
  }
  func.func @transform_0(%arg0: i32) -> (i32, i32) {
    %c0_i32 = arith.constant 0 : i32
    %c0_i32_0 = arith.constant 0 : i32
    return %arg0, %c0_i32 : i32, i32
  }
  func.func @transform_1(%arg0: i32) -> (i32, i32) {
    %c0_i32 = arith.constant 0 : i32
    %c0_i32_0 = arith.constant 0 : i32
    return %arg0, %c0_i32 : i32, i32
  }
  func.func @transform_2(%arg0: i32) -> (i32, i32) {
    %c0_i32 = arith.constant 0 : i32
    %c0_i32_0 = arith.constant 0 : i32
    %c0_i32_1 = arith.constant 0 : i32
    return %c0_i32, %c0_i32_0 : i32, i32
  }
  func.func @transform_3(%arg0: i32) -> (i32, i32) {
    %c0_i32 = arith.constant 0 : i32
    %c0_i32_0 = arith.constant 0 : i32
    %c0_i32_1 = arith.constant 0 : i32
    return %c0_i32, %c0_i32_0 : i32, i32
  }
  func.func @transform_4(%arg0: i32) -> (i32, i32) {
    %c0_i32 = arith.constant 0 : i32
    %c0_i32_0 = arith.constant 0 : i32
    %c0_i32_1 = arith.constant 0 : i32
    return %c0_i32, %c0_i32_0 : i32, i32
  }
  func.func @transform_5(%arg0: i32) -> (i32, i32) {
    %c0_i32 = arith.constant 0 : i32
    %c0_i32_0 = arith.constant 0 : i32
    %c0_i32_1 = arith.constant 0 : i32
    return %c0_i32, %c0_i32_0 : i32, i32
  }
  func.func @transform_6(%arg0: i32) -> (i32, i32) {
    %c0_i32 = arith.constant 0 : i32
    %c0_i32_0 = arith.constant 0 : i32
    %c0_i32_1 = arith.constant 0 : i32
    return %c0_i32, %c0_i32_0 : i32, i32
  }
  func.func @transform_7(%arg0: i32) -> (i32, i32) {
    %c0_i32 = arith.constant 0 : i32
    %c0_i32_0 = arith.constant 0 : i32
    %c0_i32_1 = arith.constant 0 : i32
    return %c0_i32, %c0_i32_0 : i32, i32
  }
  func.func @transform_8(%arg0: i32) -> (i32, i32) {
    %c0_i32 = arith.constant 0 : i32
    %c0_i32_0 = arith.constant 0 : i32
    %c0_i32_1 = arith.constant 0 : i32
    return %c0_i32, %c0_i32_0 : i32, i32
  }
  func.func @transform_9(%arg0: i32) -> (i32, i32) {
    %c0_i32 = arith.constant 0 : i32
    %c0_i32_0 = arith.constant 0 : i32
    %c0_i32_1 = arith.constant 0 : i32
    return %c0_i32, %c0_i32_0 : i32, i32
  }
  func.func @transform_10(%arg0: i32) -> (i32, i32) {
    %c0_i32 = arith.constant 0 : i32
    %c0_i32_0 = arith.constant 0 : i32
    return %arg0, %c0_i32 : i32, i32
  }
  func.func @transform_11(%arg0: i32) -> (i32, i32) {
    %c0_i32 = arith.constant 0 : i32
    %c0_i32_0 = arith.constant 0 : i32
    return %arg0, %c0_i32 : i32, i32
  }
  func.func @transform_12(%arg0: i32) -> (i32, i32) {
    %c0_i32 = arith.constant 0 : i32
    %c0_i32_0 = arith.constant 0 : i32
    return %arg0, %c0_i32 : i32, i32
  }
}

</mosaic_0001>

<bundles_post_ra>
// kernel: vae_forward.1
= control target key start
LH: loop header
LB: loop body
LE: loop exit
PB: predicated region body
PF: predicated region fallthrough
CT: control target
= control target key end

     0   :  { %18 = vsyncpa [#allocation3], 0  ;;  %vm1253_vm0 = vcmask 130048   ;;  %s7466_s0 = inlined_call_operand.vmem [shape: f32[8,784], index: 0, kind: input, shape index: {}]   ;;  %s7467_s1 = inlined_call_operand.vmem [shape: f32[8,128], index: 1, kind: input, shape index: {}]   ;;  %s7468_s2 = inlined_call_operand.vmem [shape: bf16[784,512], index: 2, kind: input, shape index: {}]   ;;  %s7469_s3 = inlined_call_operand.vmem [shape: f32[1,512], index: 3, kind: input, shape index: {}]   ;;  %s7470_s4 = inlined_call_operand.vmem [shape: bf16[512,256], index: 4, kind: input, shape index: {}]   ;;  %s7471_s5 = inlined_call_operand.vmem [shape: f32[1,256], index: 5, kind: input, shape index: {}]   ;;  %s7472_s6 = inlined_call_operand.vmem [shape: bf16[128,512], index: 6, kind: input, shape index: {}]   ;;  %s7473_s7 = inlined_call_operand.vmem [shape: f32[1,512], index: 7, kind: input, shape index: {}]   ;;  %s7474_s8 = inlined_call_operand.vmem [shape: bf16[512,784], index: 8, kind: input, shape index: {}]   ;;  %s7475_s9 = inlined_call_operand.vmem [shape: f32[1,784], index: 9, kind: input, shape index: {}]   ;;  %s7476_s10 = inlined_call_operand.hbm [shape: bf16[8,784], index: 10, kind: output, shape index: {0}]   ;;  %s7477_s11 = inlined_call_operand.hbm [shape: f32[8,20], index: 11, kind: output, shape index: {1}]   ;;  %s7478_s12 = inlined_call_operand.hbm [shape: f32[8,20], index: 12, kind: output, shape index: {2}]  }
   0x1   :  { %v4854_v0 = vld [vmem:[%s7468_s2 + $0xe4] ss:$16 sps:$4 sm:$0xff]   ;;  %v4858_v2 = vld [vmem:[%s7468_s2 + $0xe0] ss:$16 sps:$4 sm:$0xff]   ;;  %v42_v46 = vld [vmem:[%s7466_s0 + $0x8] sm:$0xff] }
   0x2   :  { %v4856_v1 = vld [vmem:[%s7468_s2 + $0x2e4] ss:$16 sps:$4 sm:$0xff]   ;;  %1257 = vmatprep.subr.bf16.mxu0 %v4854_v0  ;;  %v4859_v3 = vld [vmem:[%s7468_s2 + $0x2e0] ss:$16 sps:$4 sm:$0xff]   ;;  %v5922_v49 = vpack.c.bf16 %v42_v46, %v42_v46  ;;  %v44_v50 = vld [vmem:[%s7466_s0 + $0x18] sm:$0xff] }
   0x3   :  { %1298 = vmatprep.subr.bf16.mxu1 %v4856_v1  ;;  %v4860_v4 = vld [vmem:[%s7468_s2 + $0xc4] ss:$16 sps:$4 sm:$0xff]   ;;  %1258 = vmatpush1.bf16.msra.mxu0 %v4858_v2  ;;  %v4864_v6 = vld [vmem:[%s7468_s2 + $0xc0] ss:$16 sps:$4 sm:$0xff]   ;;  %v5930_v52 = vpack.c.bf16 %v44_v50, %v44_v50 }
   0x4   :  { %1299 = vmatpush1.bf16.msra.mxu1 %v4859_v3  ;;  %v4862_v5 = vld [vmem:[%s7468_s2 + $0x2c4] ss:$16 sps:$4 sm:$0xff]   ;;  %1259 = vmatprep.subr.bf16.mxu0 %v4860_v4  ;;  %v4865_v7 = vld [vmem:[%s7468_s2 + $0x2c0] ss:$16 sps:$4 sm:$0xff]  }
   0x5   :  { %1300 = vmatprep.subr.bf16.mxu1 %v4862_v5  ;;  %v4866_v8 = vld [vmem:[%s7468_s2 + $0xa4] ss:$16 sps:$4 sm:$0xff]   ;;  %v4870_v10 = vld [vmem:[%s7468_s2 + $0xa0] ss:$16 sps:$4 sm:$0xff]   ;;  %1289 = vmatprep.mubr.bf16.mxu0 %v5922_v49 }
   0x6   :  { %v4868_v9 = vld [vmem:[%s7468_s2 + $0x2a4] ss:$16 sps:$4 sm:$0xff]   ;;  %v4871_v11 = vld [vmem:[%s7468_s2 + $0x2a0] ss:$16 sps:$4 sm:$0xff]   ;;  %1330 = vmatprep.mubr.bf16.mxu1 %v5930_v52 }
   0x7   :  { %1260 = vmatpush1.bf16.msra.mxu0 %v4864_v6  ;;  %v4872_v12 = vld [vmem:[%s7468_s2 + $0x84] ss:$16 sps:$4 sm:$0xff]   ;;  %v4876_v14 = vld [vmem:[%s7468_s2 + $0x80] ss:$16 sps:$4 sm:$0xff]  }
   0x8   :  { %1301 = vmatpush1.bf16.msra.mxu1 %v4865_v7  ;;  %1261 = vmatprep.subr.bf16.mxu0 %v4866_v8  ;;  %v4874_v13 = vld [vmem:[%s7468_s2 + $0x284] ss:$16 sps:$4 sm:$0xff]   ;;  %v4877_v15 = vld [vmem:[%s7468_s2 + $0x280] ss:$16 sps:$4 sm:$0xff]  }
   0x9   :  { %1302 = vmatprep.subr.bf16.mxu1 %v4868_v9  ;;  %v4878_v16 = vld [vmem:[%s7468_s2 + $0x64] ss:$16 sps:$4 sm:$0xff]   ;;  %v4882_v18 = vld [vmem:[%s7468_s2 + $0x60] ss:$16 sps:$4 sm:$0xff]  }
   0xa   :  { %v4880_v17 = vld [vmem:[%s7468_s2 + $0x264] ss:$16 sps:$4 sm:$0xff]   ;;  %v4883_v19 = vld [vmem:[%s7468_s2 + $0x260] ss:$16 sps:$4 sm:$0xff]  }
   0xb   :  { %1262 = vmatpush1.bf16.msra.mxu0 %v4870_v10  ;;  %v4884_v20 = vld [vmem:[%s7468_s2 + $0x44] ss:$16 sps:$4 sm:$0xff]   ;;  %v4888_v22 = vld [vmem:[%s7468_s2 + $0x40] ss:$16 sps:$4 sm:$0xff]  }
   0xc   :  { %1303 = vmatpush1.bf16.msra.mxu1 %v4871_v11  ;;  %1263 = vmatprep.subr.bf16.mxu0 %v4872_v12  ;;  %v4886_v21 = vld [vmem:[%s7468_s2 + $0x244] ss:$16 sps:$4 sm:$0xff]   ;;  %v4889_v23 = vld [vmem:[%s7468_s2 + $0x240] ss:$16 sps:$4 sm:$0xff]  }
   0xd   :  { %1304 = vmatprep.subr.bf16.mxu1 %v4874_v13  ;;  %v4890_v24 = vld [vmem:[%s7468_s2 + $0x24] ss:$16 sps:$4 sm:$0xff]   ;;  %v4894_v26 = vld [vmem:[%s7468_s2 + $0x20] ss:$16 sps:$4 sm:$0xff]   ;;  %v4961_v13 = vld [vmem:[%s7468_s2 + $0xec] ss:$16 sps:$4 sm:$0xff]  }
   0xe   :  { %v4892_v25 = vld [vmem:[%s7468_s2 + $0x224] ss:$16 sps:$4 sm:$0xff]   ;;  %v4895_v27 = vld [vmem:[%s7468_s2 + $0x220] ss:$16 sps:$4 sm:$0xff]  }
   0xf   :  { %1264 = vmatpush1.bf16.msra.mxu0 %v4876_v14  ;;  %v4896_v28 = vld [vmem:[%s7468_s2 + $0x4] ss:$16 sps:$4 sm:$0xff]   ;;  %v4900_v30 = vld [vmem:[%s7468_s2] ss:$16 sps:$4 sm:$0xff]  }
  0x10   :  { %1305 = vmatpush1.bf16.msra.mxu1 %v4877_v15  ;;  %1265 = vmatprep.subr.bf16.mxu0 %v4878_v16  ;;  %v4898_v29 = vld [vmem:[%s7468_s2 + $0x204] ss:$16 sps:$4 sm:$0xff]   ;;  %v4901_v31 = vld [vmem:[%s7468_s2 + $0x200] ss:$16 sps:$4 sm:$0xff]   ;;  %v5706_v16 = vmov 0  }
  0x11   :  { %1306 = vmatprep.subr.bf16.mxu1 %v4880_v17  ;;  %v4902_v32 = vld [vmem:[%s7468_s2 + $0x1e4] ss:$16 sps:$4 sm:$0xff]   ;;  %v4906_v34 = vld [vmem:[%s7468_s2 + $0x1e0] ss:$16 sps:$4 sm:$0xff]  }
  0x12   :  { %v4904_v33 = vld [vmem:[%s7468_s2 + $0x3e4] ss:$16 sps:$4 sm:$0xff]   ;;  %v4907_v35 = vld [vmem:[%s7468_s2 + $0x3e0] ss:$16 sps:$4 sm:$0xff]  }
  0x13   :  { %1266 = vmatpush1.bf16.msra.mxu0 %v4882_v18  ;;  %v4908_v36 = vld [vmem:[%s7468_s2 + $0x1c4] ss:$16 sps:$4 sm:$0xff]   ;;  %v4912_v38 = vld [vmem:[%s7468_s2 + $0x1c0] ss:$16 sps:$4 sm:$0xff]   ;;  %v4959_v18 = vld [vmem:[%s7468_s2 + $0xe8] ss:$16 sps:$4 sm:$0xff]  }
  0x14   :  { %1307 = vmatpush1.bf16.msra.mxu1 %v4883_v19  ;;  %1267 = vmatprep.subr.bf16.mxu0 %v4884_v20  ;;  %v4910_v37 = vld [vmem:[%s7468_s2 + $0x3c4] ss:$16 sps:$4 sm:$0xff]   ;;  %v4913_v39 = vld [vmem:[%s7468_s2 + $0x3c0] ss:$16 sps:$4 sm:$0xff]  }
  0x15   :  { %1308 = vmatprep.subr.bf16.mxu1 %v4886_v21  ;;  %v4914_v40 = vld [vmem:[%s7468_s2 + $0x1a4] ss:$16 sps:$4 sm:$0xff]   ;;  %v4918_v42 = vld [vmem:[%s7468_s2 + $0x1a0] ss:$16 sps:$4 sm:$0xff]   ;;  %v4967_v21 = vld [vmem:[%s7468_s2 + $0xcc] ss:$16 sps:$4 sm:$0xff]  }
  0x16   :  { %v4916_v41 = vld [vmem:[%s7468_s2 + $0x3a4] ss:$16 sps:$4 sm:$0xff]   ;;  %v4919_v43 = vld [vmem:[%s7468_s2 + $0x3a0] ss:$16 sps:$4 sm:$0xff]  }
  0x17   :  { %1268 = vmatpush1.bf16.msra.mxu0 %v4888_v22  ;;  %v4920_v44 = vld [vmem:[%s7468_s2 + $0x184] ss:$16 sps:$4 sm:$0xff]   ;;  %v4924_v47 = vld [vmem:[%s7468_s2 + $0x180] ss:$16 sps:$4 sm:$0xff]  }
  0x18   :  { %1309 = vmatpush1.bf16.msra.mxu1 %v4889_v23  ;;  %1269 = vmatprep.subr.bf16.mxu0 %v4890_v24  ;;  %v4922_v45 = vld [vmem:[%s7468_s2 + $0x384] ss:$16 sps:$4 sm:$0xff]   ;;  %v4925_v48 = vld [vmem:[%s7468_s2 + $0x380] ss:$16 sps:$4 sm:$0xff]   ;;  %v4965_v23 = vld [vmem:[%s7468_s2 + $0xc8] ss:$16 sps:$4 sm:$0xff]  }
  0x19   :  { %1310 = vmatprep.subr.bf16.mxu1 %v4892_v25  ;;  %v4926_v51 = vld [vmem:[%s7468_s2 + $0x164] ss:$16 sps:$4 sm:$0xff]   ;;  %v4930_v54 = vld [vmem:[%s7468_s2 + $0x160] ss:$16 sps:$4 sm:$0xff]   ;;  %v4973_v25 = vld [vmem:[%s7468_s2 + $0xac] ss:$16 sps:$4 sm:$0xff]  }
  0x1a   :  { %v4928_v53 = vld [vmem:[%s7468_s2 + $0x364] ss:$16 sps:$4 sm:$0xff]   ;;  %v4931_v55 = vld [vmem:[%s7468_s2 + $0x360] ss:$16 sps:$4 sm:$0xff]  }
  0x1b   :  { %1270 = vmatpush1.bf16.msra.mxu0 %v4894_v26  ;;  %v4932_v56 = vld [vmem:[%s7468_s2 + $0x144] ss:$16 sps:$4 sm:$0xff]   ;;  %v4936_v58 = vld [vmem:[%s7468_s2 + $0x140] ss:$16 sps:$4 sm:$0xff]  }
  0x1c   :  { %1311 = vmatpush1.bf16.msra.mxu1 %v4895_v27  ;;  %1271 = vmatprep.subr.bf16.mxu0 %v4896_v28  ;;  %v4934_v57 = vld [vmem:[%s7468_s2 + $0x344] ss:$16 sps:$4 sm:$0xff]   ;;  %v4937_v59 = vld [vmem:[%s7468_s2 + $0x340] ss:$16 sps:$4 sm:$0xff]   ;;  %v4971_v27 = vld [vmem:[%s7468_s2 + $0xa8] ss:$16 sps:$4 sm:$0xff]  }
  0x1d   :  { %1312 = vmatprep.subr.bf16.mxu1 %v4898_v29  ;;  %v4938_v60 = vld [vmem:[%s7468_s2 + $0x124] ss:$16 sps:$4 sm:$0xff]   ;;  %v4942_v62 = vld [vmem:[%s7468_s2 + $0x120] ss:$16 sps:$4 sm:$0xff]   ;;  %v4979_v29 = vld [vmem:[%s7468_s2 + $0x8c] ss:$16 sps:$4 sm:$0xff]  }
  0x1e   :  { %v4940_v61 = vld [vmem:[%s7468_s2 + $0x324] ss:$16 sps:$4 sm:$0xff]   ;;  %v4943_v63 = vld [vmem:[%s7468_s2 + $0x320] ss:$16 sps:$4 sm:$0xff]  }
  0x1f   :  { %1272 = vmatpush1.bf16.msra.mxu0 %v4900_v30  ;;  %v4944_v0 = vld [vmem:[%s7468_s2 + $0x104] ss:$16 sps:$4 sm:$0xff]   ;;  %v4948_v2 = vld [vmem:[%s7468_s2 + $0x100] ss:$16 sps:$4 sm:$0xff]  }
  0x20   :  { %1313 = vmatpush1.bf16.msra.mxu1 %v4901_v31  ;;  %1273 = vmatprep.subr.bf16.mxu0 %v4902_v32  ;;  %v4946_v1 = vld [vmem:[%s7468_s2 + $0x304] ss:$16 sps:$4 sm:$0xff]   ;;  %v4949_v3 = vld [vmem:[%s7468_s2 + $0x300] ss:$16 sps:$4 sm:$0xff]   ;;  %v4977_v31 = vld [vmem:[%s7468_s2 + $0x88] ss:$16 sps:$4 sm:$0xff]  }
  0x21   :  { %1314 = vmatprep.subr.bf16.mxu1 %v4904_v33  ;;  %v41_v4 = vld [vmem:[%s7466_s0] sm:$0xff]  ;;  %v43_v5 = vld [vmem:[%s7466_s0 + $0x10] sm:$0xff]  ;;  %v4985_v33 = vld [vmem:[%s7468_s2 + $0x6c] ss:$16 sps:$4 sm:$0xff]  }
  0x22   :  { %v4952_v6 = vld [vmem:[%s7468_s2 + $0x4e4] ss:$16 sps:$4 sm:$0xff]   ;;  %v5991_v8 = vpack.c.bf16 %v41_v4, %v41_v4  ;;  %v5993_v9 = vpack.c.bf16 %v43_v5, %v43_v5  ;;  %v4950_v10 = vld [vmem:[%s7468_s2 + $0x4e0] ss:$16 sps:$4 sm:$0xff]   ;;  %v5033_v4 = vld [vmem:[%s7468_s2 + $0x16c] ss:$16 sps:$4 sm:$0xff]  }
  0x23   :  { %1274 = vmatpush2.bf16.msra.mxu0 %v4906_v34  ;;  %v4955_v7 = vld [vmem:[%s7468_s2 + $0x604] ss:$16 sps:$4 sm:$0xff]   ;;  %v4953_v11 = vld [vmem:[%s7468_s2 + $0x600] ss:$16 sps:$4 sm:$0xff]  }
  0x24   :  { %1315 = vmatpush2.bf16.msra.mxu1 %v4907_v35  ;;  %1275 = vmatprep.subr.bf16.mxu0 %v4908_v36  ;;  %v4958_v12 = vld [vmem:[%s7468_s2 + $0x4c4] ss:$16 sps:$4 sm:$0xff]   ;;  %v4956_v14 = vld [vmem:[%s7468_s2 + $0x4c0] ss:$16 sps:$4 sm:$0xff]   ;;  %v46_v35 = vld [vmem:[%s7466_s0 + $0x28] sm:$0xff] }
  0x25   :  { %1316 = vmatprep.subr.bf16.mxu1 %v4910_v37  ;;  %v47_v15 = vld [vmem:[%s7466_s0 + $0x30] sm:$0xff]  ;;  %v6075_v36 = vpack.c.bf16 %v46_v35, %v46_v35  ;;  %v4983_v37 = vld [vmem:[%s7468_s2 + $0x68] ss:$16 sps:$4 sm:$0xff]  }
  0x26   :  { %v4964_v17 = vld [vmem:[%s7468_s2 + $0x4a4] ss:$16 sps:$4 sm:$0xff]   ;;  %v6022_v19 = vpack.c.bf16 %v47_v15, %v47_v15  ;;  %v4962_v20 = vld [vmem:[%s7468_s2 + $0x4a0] ss:$16 sps:$4 sm:$0xff]   ;;  %v5067_v35 = vld [vmem:[%s7468_s2 + $0x4a8] ss:$16 sps:$4 sm:$0xff]  }
  0x27   :  { %1276 = vmatpush2.bf16.msra.mxu0 %v4912_v38  ;;  %v4970_v22 = vld [vmem:[%s7468_s2 + $0x484] ss:$16 sps:$4 sm:$0xff]   ;;  %v4968_v24 = vld [vmem:[%s7468_s2 + $0x480] ss:$16 sps:$4 sm:$0xff]  }
  0x28   :  { %1317 = vmatpush2.bf16.msra.mxu1 %v4913_v39  ;;  %1277 = vmatprep.subr.bf16.mxu0 %v4914_v40  ;;  %v4976_v26 = vld [vmem:[%s7468_s2 + $0x464] ss:$16 sps:$4 sm:$0xff]   ;;  %v4974_v28 = vld [vmem:[%s7468_s2 + $0x460] ss:$16 sps:$4 sm:$0xff]   ;;  %v4991_v39 = vld [vmem:[%s7468_s2 + $0x4c] ss:$16 sps:$4 sm:$0xff]  }
  0x29   :  { %1318 = vmatprep.subr.bf16.mxu1 %v4916_v41  ;;  %v4982_v30 = vld [vmem:[%s7468_s2 + $0x444] ss:$16 sps:$4 sm:$0xff]   ;;  %v4980_v32 = vld [vmem:[%s7468_s2 + $0x440] ss:$16 sps:$4 sm:$0xff]   ;;  %v4989_v41 = vld [vmem:[%s7468_s2 + $0x48] ss:$16 sps:$4 sm:$0xff]  }
  0x2a   :  { %v4988_v34 = vld [vmem:[%s7468_s2 + $0x424] ss:$16 sps:$4 sm:$0xff]   ;;  %v4986_v38 = vld [vmem:[%s7468_s2 + $0x420] ss:$16 sps:$4 sm:$0xff]  }
  0x2b   :  { %1278 = vmatpush2.bf16.msra.mxu0 %v4918_v42  ;;  %v4994_v40 = vld [vmem:[%s7468_s2 + $0x404] ss:$16 sps:$4 sm:$0xff]   ;;  %v4992_v42 = vld [vmem:[%s7468_s2 + $0x400] ss:$16 sps:$4 sm:$0xff]  }
  0x2c   :  { %1319 = vmatpush2.bf16.msra.mxu1 %v4919_v43  ;;  %1279 = vmatprep.subr.bf16.mxu0 %v4920_v44  ;;  %v4997_v43 = vld [vmem:[%s7468_s2 + $0x2c] ss:$16 sps:$4 sm:$0xff]   ;;  %v5000_v44 = vld [vmem:[%s7468_s2 + $0x5e4] ss:$16 sps:$4 sm:$0xff]   ;;  %v4998_v46 = vld [vmem:[%s7468_s2 + $0x5e0] ss:$16 sps:$4 sm:$0xff]  }
  0x2d   :  { %1320 = vmatprep.subr.bf16.mxu1 %v4922_v45  ;;  %v4995_v45 = vld [vmem:[%s7468_s2 + $0x28] ss:$16 sps:$4 sm:$0xff]   ;;  %v5004_v50 = vld [vmem:[%s7468_s2 + $0x5c0] ss:$16 sps:$4 sm:$0xff]   ;;  %v5036_v5 = vld [vmem:[%s7468_s2 + $0x524] ss:$16 sps:$4 sm:$0xff]  }
  0x2e   :  { %v45_v15 = vld [vmem:[%s7466_s0 + $0x20] sm:$0xff] }
  0x2f   :  { %1280 = vmatpush2.bf16.msra.mxu0 %v4924_v47  ;;  %v5003_v47 = vld [vmem:[%s7468_s2 + $0xc] ss:$16 sps:$4 sm:$0xff]  }
  0x30   :  { %1321 = vmatpush2.bf16.msra.mxu1 %v4925_v48  ;;  %1281 = vmatprep.subr.bf16.mxu0 %v4926_v51  ;;  %v5006_v48 = vld [vmem:[%s7468_s2 + $0x5c4] ss:$16 sps:$4 sm:$0xff]   ;;  %v5009_v51 = vld [vmem:[%s7468_s2 + $0x1ec] ss:$16 sps:$4 sm:$0xff]  }
  0x31   :  { %1322 = vmatprep.subr.bf16.mxu1 %v4928_v53  ;;  %v5012_v53 = vld [vmem:[%s7468_s2 + $0x5a4] ss:$16 sps:$4 sm:$0xff]  }
  0x33   :  { %1282 = vmatpush2.bf16.msra.mxu0 %v4930_v54  ;;  %v5007_v54 = vld [vmem:[%s7468_s2 + $0x1e8] ss:$16 sps:$4 sm:$0xff]  }
  0x34   :  { %1323 = vmatpush2.bf16.msra.mxu1 %v4931_v55  ;;  %1283 = vmatprep.subr.bf16.mxu0 %v4932_v56  ;;  %v5010_v55 = vld [vmem:[%s7468_s2 + $0x5a0] ss:$16 sps:$4 sm:$0xff]   ;;  %v5015_v56 = vld [vmem:[%s7468_s2 + $0x1cc] ss:$16 sps:$4 sm:$0xff]  }
  0x35   :  { %1324 = vmatprep.subr.bf16.mxu1 %v4934_v57  ;;  %v5018_v57 = vld [vmem:[%s7468_s2 + $0x584] ss:$16 sps:$4 sm:$0xff]  }
  0x37   :  { %1284 = vmatpush2.bf16.msra.mxu0 %v4936_v58  ;;  %v5013_v58 = vld [vmem:[%s7468_s2 + $0x1c8] ss:$16 sps:$4 sm:$0xff]  }
  0x38   :  { %1325 = vmatpush2.bf16.msra.mxu1 %v4937_v59  ;;  %1285 = vmatprep.subr.bf16.mxu0 %v4938_v60  ;;  %v5016_v59 = vld [vmem:[%s7468_s2 + $0x580] ss:$16 sps:$4 sm:$0xff]   ;;  %v5021_v60 = vld [vmem:[%s7468_s2 + $0x1ac] ss:$16 sps:$4 sm:$0xff]  }
  0x39   :  { %1326 = vmatprep.subr.bf16.mxu1 %v4940_v61  ;;  %v5024_v61 = vld [vmem:[%s7468_s2 + $0x564] ss:$16 sps:$4 sm:$0xff]  }
  0x3b   :  { %1286 = vmatpush2.bf16.msra.mxu0 %v4942_v62  ;;  %v5019_v62 = vld [vmem:[%s7468_s2 + $0x1a8] ss:$16 sps:$4 sm:$0xff]  }
  0x3c   :  { %1327 = vmatpush2.bf16.msra.mxu1 %v4943_v63  ;;  %1287 = vmatprep.subr.bf16.mxu0 %v4944_v0  ;;  %v5022_v63 = vld [vmem:[%s7468_s2 + $0x560] ss:$16 sps:$4 sm:$0xff]   ;;  %v5027_v0 = vld [vmem:[%s7468_s2 + $0x18c] ss:$16 sps:$4 sm:$0xff]  }
  0x3d   :  { %1328 = vmatprep.subr.bf16.mxu1 %v4946_v1  ;;  %v5030_v1 = vld [vmem:[%s7468_s2 + $0x544] ss:$16 sps:$4 sm:$0xff]  }
  0x3f   :  { %1288 = vmatpush2.bf16.msra.mxu0 %v4948_v2  ;;  %v5025_v2 = vld [vmem:[%s7468_s2 + $0x188] ss:$16 sps:$4 sm:$0xff]  }
  0x40   :  { %1329 = vmatpush2.bf16.msra.mxu1 %v4949_v3  ;;  %1339 = vmatprep.subr.bf16.mxu0 %v4952_v6  ;;  %v5028_v3 = vld [vmem:[%s7468_s2 + $0x540] ss:$16 sps:$4 sm:$0xff]   ;;  %v5031_v6 = vld [vmem:[%s7468_s2 + $0x168] ss:$16 sps:$4 sm:$0xff]  }
  0x41   :  { %1394 = vmatprep.subr.bf16.mxu1 %v4955_v7  ;;  %v5034_v7 = vld [vmem:[%s7468_s2 + $0x520] ss:$16 sps:$4 sm:$0xff]  }
  0x42   :  { %1290 = vmatmul.mubr.bf16.vlgmr.msra.gmra.mxu0 %v5991_v8 }
  0x43   :  { %1331 = vmatmul.mubr.bf16.vlgmr.msra.gmra.mxu1 %v5993_v9  ;;  %1340 = vmatpush1.bf16.msra.mxu0 %v4950_v10  ;;  %v5039_v10 = vld [vmem:[%s7468_s2 + $0x14c] ss:$16 sps:$4 sm:$0xff]  }
  0x44   :  { %1395 = vmatpush1.bf16.msra.mxu1 %v4953_v11  ;;  %1341 = vmatprep.subr.bf16.mxu0 %v4958_v12  ;;  %v5042_v11 = vld [vmem:[%s7468_s2 + $0x504] ss:$16 sps:$4 sm:$0xff]   ;;  %v5037_v12 = vld [vmem:[%s7468_s2 + $0x148] ss:$16 sps:$4 sm:$0xff]  }
  0x45   :  { %1412 = vmatprep.mubr.bf16.mxu1 %v5706_v16  ;;  %1421 = vmatprep.subr.bf16.mxu1 %v4961_v13  ;;  %v5040_v13 = vld [vmem:[%s7468_s2 + $0x500] ss:$16 sps:$4 sm:$0xff]  }
  0x46   :  { %1371 = vmatprep.mubr.bf16.mxu0 %v6075_v36 }
  0x47   :  { %1342 = vmatpush1.bf16.msra.mxu0 %v4956_v14  ;;  %v5045_v14 = vld [vmem:[%s7468_s2 + $0x12c] ss:$16 sps:$4 sm:$0xff]  }
  0x48   :  { %1343 = vmatprep.subr.bf16.mxu0 %v4964_v17  ;;  %v5048_v17 = vld [vmem:[%s7468_s2 + $0x2ec] ss:$16 sps:$4 sm:$0xff]  }
  0x4b   :  { %4476 = vmatmul.mubr.msk.bf16.vlgmr.msra.gmra.mxu1 %vm1253_vm0, %v6022_v19  ;;  %1344 = vmatpush1.bf16.msra.mxu0 %v4962_v20  ;;  %v6204_v20 = vpack.c.bf16 %v45_v15, %v45_v15  ;;  %v5135_v15 = vld [vmem:[%s7468_s2 + $0x54c] ss:$16 sps:$4 sm:$0xff]  }
  0x4c   :  { %1422 = vmatpush1.bf16.msra.mxu1 %v4959_v18  ;;  %1345 = vmatprep.subr.bf16.mxu0 %v4970_v22  ;;  %v5043_v18 = vld [vmem:[%s7468_s2 + $0x128] ss:$16 sps:$4 sm:$0xff]   ;;  %v5051_v22 = vld [vmem:[%s7468_s2 + $0x10c] ss:$16 sps:$4 sm:$0xff]  }
  0x4d   :  { %1423 = vmatprep.subr.bf16.mxu1 %v4967_v21  ;;  %1453 = vmatprep.mubr.bf16.mxu1 %v5922_v49  ;;  %v5001_v49 = vld [vmem:[%s7468_s2 + $0x8] ss:$16 sps:$4 sm:$0xff]  }
  0x4e   :  { %v5046_v21 = vld [vmem:[%s7468_s2 + $0x2e8] ss:$16 sps:$4 sm:$0xff]  }
  0x4f   :  { %1346 = vmatpush1.bf16.msra.mxu0 %v4968_v24  ;;  %v5049_v24 = vld [vmem:[%s7468_s2 + $0x108] ss:$16 sps:$4 sm:$0xff]  }
  0x50   :  { %1424 = vmatpush1.bf16.msra.mxu1 %v4965_v23  ;;  %1347 = vmatprep.subr.bf16.mxu0 %v4976_v26  ;;  %v5054_v23 = vld [vmem:[%s7468_s2 + $0x2cc] ss:$16 sps:$4 sm:$0xff]  }
  0x51   :  { %1425 = vmatprep.subr.bf16.mxu1 %v4973_v25  ;;  %v5052_v25 = vld [vmem:[%s7468_s2 + $0x2c8] ss:$16 sps:$4 sm:$0xff]   ;;  %v5057_v26 = vld [vmem:[%s7468_s2 + $0x4ec] ss:$16 sps:$4 sm:$0xff]  }
  0x53   :  { %1348 = vmatpush1.bf16.msra.mxu0 %v4974_v28  ;;  %v5055_v28 = vld [vmem:[%s7468_s2 + $0x4e8] ss:$16 sps:$4 sm:$0xff]  }
  0x54   :  { %1426 = vmatpush1.bf16.msra.mxu1 %v4971_v27  ;;  %1349 = vmatprep.subr.bf16.mxu0 %v4982_v30  ;;  %v5060_v27 = vld [vmem:[%s7468_s2 + $0x2ac] ss:$16 sps:$4 sm:$0xff]  }
  0x55   :  { %1427 = vmatprep.subr.bf16.mxu1 %v4979_v29  ;;  %v5058_v29 = vld [vmem:[%s7468_s2 + $0x2a8] ss:$16 sps:$4 sm:$0xff]   ;;  %v5063_v30 = vld [vmem:[%s7468_s2 + $0x4cc] ss:$16 sps:$4 sm:$0xff]  }
  0x57   :  { %1350 = vmatpush1.bf16.msra.mxu0 %v4980_v32  ;;  %v5061_v32 = vld [vmem:[%s7468_s2 + $0x4c8] ss:$16 sps:$4 sm:$0xff]  }
  0x58   :  { %1428 = vmatpush1.bf16.msra.mxu1 %v4977_v31  ;;  %1351 = vmatprep.subr.bf16.mxu0 %v4988_v34  ;;  %v5066_v31 = vld [vmem:[%s7468_s2 + $0x28c] ss:$16 sps:$4 sm:$0xff]  }
  0x59   :  { %1429 = vmatprep.subr.bf16.mxu1 %v4985_v33  ;;  %v5069_v33 = vld [vmem:[%s7468_s2 + $0x4ac] ss:$16 sps:$4 sm:$0xff]  }
  0x5a   :  { %v5072_v34 = vld [vmem:[%s7468_s2 + $0x26c] ss:$16 sps:$4 sm:$0xff]  }
  0x5b   :  { %1352 = vmatpush1.bf16.msra.mxu0 %v4986_v38  ;;  %v5078_v38 = vld [vmem:[%s7468_s2 + $0x24c] ss:$16 sps:$4 sm:$0xff]  }
  0x5c   :  { %1430 = vmatpush1.bf16.msra.mxu1 %v4983_v37  ;;  %1353 = vmatprep.subr.bf16.mxu0 %v4994_v40  ;;  %v5075_v37 = vld [vmem:[%s7468_s2 + $0x48c] ss:$16 sps:$4 sm:$0xff]  }
  0x5d   :  { %1431 = vmatprep.subr.bf16.mxu1 %v4991_v39  ;;  %v5076_v39 = vld [vmem:[%s7468_s2 + $0x248] ss:$16 sps:$4 sm:$0xff]   ;;  %v5081_v40 = vld [vmem:[%s7468_s2 + $0x46c] ss:$16 sps:$4 sm:$0xff]  }
  0x5f   :  { %1354 = vmatpush1.bf16.msra.mxu0 %v4992_v42  ;;  %v5079_v42 = vld [vmem:[%s7468_s2 + $0x468] ss:$16 sps:$4 sm:$0xff]  }
  0x60   :  { %1432 = vmatpush1.bf16.msra.mxu1 %v4989_v41  ;;  %1355 = vmatprep.subr.bf16.mxu0 %v5000_v44  ;;  %v5084_v41 = vld [vmem:[%s7468_s2 + $0x22c] ss:$16 sps:$4 sm:$0xff]  }
  0x61   :  { %1433 = vmatprep.subr.bf16.mxu1 %v4997_v43  ;;  %v5082_v43 = vld [vmem:[%s7468_s2 + $0x228] ss:$16 sps:$4 sm:$0xff]   ;;  %v5087_v44 = vld [vmem:[%s7468_s2 + $0x44c] ss:$16 sps:$4 sm:$0xff]  }
  0x63   :  { %1356 = vmatpush2.bf16.msra.mxu0 %v4998_v46  ;;  %v5085_v46 = vld [vmem:[%s7468_s2 + $0x448] ss:$16 sps:$4 sm:$0xff]  }
  0x64   :  { %1434 = vmatpush1.bf16.msra.mxu1 %v4995_v45  ;;  %1357 = vmatprep.subr.bf16.mxu0 %v5006_v48  ;;  %v5090_v45 = vld [vmem:[%s7468_s2 + $0x20c] ss:$16 sps:$4 sm:$0xff]  }
  0x65   :  { %1435 = vmatprep.subr.bf16.mxu1 %v5003_v47  ;;  %v5088_v47 = vld [vmem:[%s7468_s2 + $0x208] ss:$16 sps:$4 sm:$0xff]   ;;  %v5093_v48 = vld [vmem:[%s7468_s2 + $0x42c] ss:$16 sps:$4 sm:$0xff]  }
  0x67   :  { %1358 = vmatpush2.bf16.msra.mxu0 %v5004_v50  ;;  %v5091_v50 = vld [vmem:[%s7468_s2 + $0x428] ss:$16 sps:$4 sm:$0xff]  }
  0x68   :  { %1436 = vmatpush1.bf16.msra.mxu1 %v5001_v49  ;;  %1359 = vmatprep.subr.bf16.mxu0 %v5012_v53  ;;  %v5096_v49 = vld [vmem:[%s7468_s2 + $0x3ec] ss:$16 sps:$4 sm:$0xff]  }
  0x69   :  { %1437 = vmatprep.subr.bf16.mxu1 %v5009_v51  ;;  %v5094_v51 = vld [vmem:[%s7468_s2 + $0x3e8] ss:$16 sps:$4 sm:$0xff]   ;;  %v5099_v53 = vld [vmem:[%s7468_s2 + $0x40c] ss:$16 sps:$4 sm:$0xff]  }
  0x6b   :  { %1360 = vmatpush2.bf16.msra.mxu0 %v5010_v55  ;;  %v5097_v55 = vld [vmem:[%s7468_s2 + $0x408] ss:$16 sps:$4 sm:$0xff]  }
  0x6c   :  { %1438 = vmatpush2.bf16.msra.mxu1 %v5007_v54  ;;  %1361 = vmatprep.subr.bf16.mxu0 %v5018_v57  ;;  %v5102_v54 = vld [vmem:[%s7468_s2 + $0x3cc] ss:$16 sps:$4 sm:$0xff]  }
  0x6d   :  { %1439 = vmatprep.subr.bf16.mxu1 %v5015_v56  ;;  %v5100_v56 = vld [vmem:[%s7468_s2 + $0x3c8] ss:$16 sps:$4 sm:$0xff]   ;;  %v5105_v57 = vld [vmem:[%s7468_s2 + $0x5ec] ss:$16 sps:$4 sm:$0xff]  }
  0x6f   :  { %1362 = vmatpush2.bf16.msra.mxu0 %v5016_v59  ;;  %v5103_v59 = vld [vmem:[%s7468_s2 + $0x5e8] ss:$16 sps:$4 sm:$0xff]  }
  0x70   :  { %1440 = vmatpush2.bf16.msra.mxu1 %v5013_v58  ;;  %1363 = vmatprep.subr.bf16.mxu0 %v5024_v61  ;;  %v5108_v58 = vld [vmem:[%s7468_s2 + $0x3ac] ss:$16 sps:$4 sm:$0xff]  }
  0x71   :  { %1441 = vmatprep.subr.bf16.mxu1 %v5021_v60  ;;  %v5106_v60 = vld [vmem:[%s7468_s2 + $0x3a8] ss:$16 sps:$4 sm:$0xff]   ;;  %v5111_v61 = vld [vmem:[%s7468_s2 + $0x5cc] ss:$16 sps:$4 sm:$0xff]  }
  0x73   :  { %1364 = vmatpush2.bf16.msra.mxu0 %v5022_v63  ;;  %v5109_v63 = vld [vmem:[%s7468_s2 + $0x5c8] ss:$16 sps:$4 sm:$0xff]  }
  0x74   :  { %1442 = vmatpush2.bf16.msra.mxu1 %v5019_v62  ;;  %1365 = vmatprep.subr.bf16.mxu0 %v5030_v1  ;;  %v5114_v62 = vld [vmem:[%s7468_s2 + $0x38c] ss:$16 sps:$4 sm:$0xff]  }
  0x75   :  { %1443 = vmatprep.subr.bf16.mxu1 %v5027_v0  ;;  %v5112_v0 = vld [vmem:[%s7468_s2 + $0x388] ss:$16 sps:$4 sm:$0xff]   ;;  %v5117_v1 = vld [vmem:[%s7468_s2 + $0x5ac] ss:$16 sps:$4 sm:$0xff]  }
  0x77   :  { %1366 = vmatpush2.bf16.msra.mxu0 %v5028_v3  ;;  %v5115_v3 = vld [vmem:[%s7468_s2 + $0x5a8] ss:$16 sps:$4 sm:$0xff]  }
  0x78   :  { %1444 = vmatpush2.bf16.msra.mxu1 %v5025_v2  ;;  %1367 = vmatprep.subr.bf16.mxu0 %v5036_v5  ;;  %v5120_v2 = vld [vmem:[%s7468_s2 + $0x36c] ss:$16 sps:$4 sm:$0xff]  }
  0x79   :  { %1445 = vmatprep.subr.bf16.mxu1 %v5033_v4  ;;  %v5118_v4 = vld [vmem:[%s7468_s2 + $0x368] ss:$16 sps:$4 sm:$0xff]   ;;  %v5123_v5 = vld [vmem:[%s7468_s2 + $0x58c] ss:$16 sps:$4 sm:$0xff]  }
  0x7b   :  { %1368 = vmatpush2.bf16.msra.mxu0 %v5034_v7  ;;  %v5121_v7 = vld [vmem:[%s7468_s2 + $0x588] ss:$16 sps:$4 sm:$0xff]  }
  0x7c   :  { %1446 = vmatpush2.bf16.msra.mxu1 %v5031_v6  ;;  %1369 = vmatprep.subr.bf16.mxu0 %v5042_v11  ;;  %v5126_v6 = vld [vmem:[%s7468_s2 + $0x34c] ss:$16 sps:$4 sm:$0xff]  }
  0x7d   :  { %1447 = vmatprep.subr.bf16.mxu1 %v5039_v10  ;;  %v5124_v10 = vld [vmem:[%s7468_s2 + $0x348] ss:$16 sps:$4 sm:$0xff]   ;;  %v5129_v11 = vld [vmem:[%s7468_s2 + $0x56c] ss:$16 sps:$4 sm:$0xff]  }
  0x7f   :  { %1370 = vmatpush2.bf16.msra.mxu0 %v5040_v13  ;;  %v5127_v13 = vld [vmem:[%s7468_s2 + $0x568] ss:$16 sps:$4 sm:$0xff]  }
  0x80   :  { %1448 = vmatpush2.bf16.msra.mxu1 %v5037_v12  ;;  %1462 = vmatprep.subr.bf16.mxu0 %v5048_v17  ;;  %v5132_v12 = vld [vmem:[%s7468_s2 + $0x32c] ss:$16 sps:$4 sm:$0xff]  }
  0x81   :  { %1449 = vmatprep.subr.bf16.mxu1 %v5045_v14  ;;  %v5130_v14 = vld [vmem:[%s7468_s2 + $0x328] ss:$16 sps:$4 sm:$0xff]   ;;  %v5138_v17 = vld [vmem:[%s7468_s2 + $0x30c] ss:$16 sps:$4 sm:$0xff]  }
  0x82   :  { %1372 = vmatmul.mubr.bf16.vlgmr.msra.gmra.mxu0 %v6204_v20 }
  0x83   :  { %1463 = vmatpush1.bf16.msra.mxu0 %v5046_v21  ;;  %1494 = vmatprep.mubr.bf16.mxu0 %v5930_v52  ;;  %v5064_v52 = vld [vmem:[%s7468_s2 + $0x288] ss:$16 sps:$4 sm:$0xff]  }
  0x84   :  { %1450 = vmatpush2.bf16.msra.mxu1 %v5043_v18  ;;  %1464 = vmatprep.subr.bf16.mxu0 %v5054_v23  ;;  %v5133_v18 = vld [vmem:[%s7468_s2 + $0x548] ss:$16 sps:$4 sm:$0xff]   ;;  %v5144_v23 = vld [vmem:[%s7468_s2 + $0x60c] ss:$16 sps:$4 sm:$0xff]  }
  0x85   :  { %1451 = vmatprep.subr.bf16.mxu1 %v5051_v22  ;;  %v5136_v21 = vld [vmem:[%s7468_s2 + $0x308] ss:$16 sps:$4 sm:$0xff]   ;;  %v5141_v22 = vld [vmem:[%s7468_s2 + $0x52c] ss:$16 sps:$4 sm:$0xff]  }
  0x87   :  { %1465 = vmatpush1.bf16.msra.mxu0 %v5052_v25  ;;  %v5142_v25 = vld [vmem:[%s7468_s2 + $0x608] ss:$16 sps:$4 sm:$0xff]  }
  0x88   :  { %1452 = vmatpush2.bf16.msra.mxu1 %v5049_v24  ;;  %1466 = vmatprep.subr.bf16.mxu0 %v5060_v27  ;;  %v5139_v24 = vld [vmem:[%s7468_s2 + $0x528] ss:$16 sps:$4 sm:$0xff]   ;;  %v5150_v27 = vld [vmem:[%s7470_s4 + $0x74] ss:$8 sps:$4 sm:$0xff]  }
  0x89   :  { %1503 = vmatprep.subr.bf16.mxu1 %v5057_v26  ;;  %v5147_v26 = vld [vmem:[%s7468_s2 + $0x50c] ss:$16 sps:$4 sm:$0xff]  }
  0x8b   :  { %1454 = vmatmul.mubr.bf16.vlgmr.msra.gmra.mxu1 %v5991_v8  ;;  %1467 = vmatpush1.bf16.msra.mxu0 %v5058_v29  ;;  %v5070_v8 = vld [vmem:[%s7468_s2 + $0x268] ss:$16 sps:$4 sm:$0xff]  }
  0x8c   :  { %1504 = vmatpush1.bf16.msra.mxu1 %v5055_v28  ;;  %1468 = vmatprep.subr.bf16.mxu0 %v5066_v31  ;;  %v5145_v28 = vld [vmem:[%s7468_s2 + $0x508] ss:$16 sps:$4 sm:$0xff]   ;;  %v5156_v31 = vld [vmem:[%s7470_s4 + $0x54] ss:$8 sps:$4 sm:$0xff]  }
  0x8d   :  { %1505 = vmatprep.subr.bf16.mxu1 %v5063_v30  ;;  %1535 = vmatprep.mubr.bf16.mxu1 %v6075_v36  ;;  %v5073_v36 = vld [vmem:[%s7468_s2 + $0x488] ss:$16 sps:$4 sm:$0xff]   ;;  %v5153_v30 = vld [vmem:[%s7470_s4 + $0x64] ss:$8 sps:$4 sm:$0xff]  }
  0x8e   :  { %v5148_v29 = vld [vmem:[%s7470_s4 + $0x70] ss:$8 sps:$4 sm:$0xff]  }
  0x8f   :  { %1469 = vmatpush1.bf16.msra.mxu0 %v5064_v52  ;;  %v5159_v52 = vld [vmem:[%s7470_s4 + $0x44] ss:$8 sps:$4 sm:$0xff]  }
  0x90   :  { %1506 = vmatpush1.bf16.msra.mxu1 %v5061_v32  ;;  %1470 = vmatprep.subr.bf16.mxu0 %v5072_v34  ;;  %v5154_v32 = vld [vmem:[%s7470_s4 + $0x50] ss:$8 sps:$4 sm:$0xff]   ;;  %v5157_v34 = vld [vmem:[%s7470_s4 + $0x40] ss:$8 sps:$4 sm:$0xff]  }
  0x91   :  { %1507 = vmatprep.subr.bf16.mxu1 %v5069_v33  ;;  %v5201_v33 = vld [vmem:[%s7470_s4 + $0x164] ss:$8 sps:$4 sm:$0xff]  }
  0x93   :  { %1471 = vmatpush1.bf16.msra.mxu0 %v5070_v8  ;;  %v5162_v8 = vld [vmem:[%s7470_s4 + $0x34] ss:$8 sps:$4 sm:$0xff]  }
  0x94   :  { %1508 = vmatpush1.bf16.msra.mxu1 %v5067_v35  ;;  %1472 = vmatprep.subr.bf16.mxu0 %v5078_v38  ;;  %v5199_v35 = vld [vmem:[%s7470_s4 + $0x160] ss:$8 sps:$4 sm:$0xff]   ;;  %v5160_v38 = vld [vmem:[%s7470_s4 + $0x30] ss:$8 sps:$4 sm:$0xff]  }
  0x95   :  { %1509 = vmatprep.subr.bf16.mxu1 %v5075_v37  ;;  %v5204_v37 = vld [vmem:[%s7470_s4 + $0x154] ss:$8 sps:$4 sm:$0xff]  }
  0x97   :  { %1473 = vmatpush1.bf16.msra.mxu0 %v5076_v39  ;;  %v5202_v39 = vld [vmem:[%s7470_s4 + $0x150] ss:$8 sps:$4 sm:$0xff]  }
  0x98   :  { %1510 = vmatpush1.bf16.msra.mxu1 %v5073_v36  ;;  %1474 = vmatprep.subr.bf16.mxu0 %v5084_v41  ;;  %v5165_v36 = vld [vmem:[%s7470_s4 + $0x24] ss:$8 sps:$4 sm:$0xff]   ;;  %v5163_v41 = vld [vmem:[%s7470_s4 + $0x20] ss:$8 sps:$4 sm:$0xff]  }
  0x99   :  { %1511 = vmatprep.subr.bf16.mxu1 %v5081_v40  ;;  %v5207_v40 = vld [vmem:[%s7470_s4 + $0x144] ss:$8 sps:$4 sm:$0xff]  }
  0x9b   :  { %1475 = vmatpush1.bf16.msra.mxu0 %v5082_v43  ;;  %v5168_v43 = vld [vmem:[%s7470_s4 + $0x14] ss:$8 sps:$4 sm:$0xff]  }
  0x9c   :  { %1512 = vmatpush1.bf16.msra.mxu1 %v5079_v42  ;;  %1476 = vmatprep.subr.bf16.mxu0 %v5090_v45  ;;  %v5205_v42 = vld [vmem:[%s7470_s4 + $0x140] ss:$8 sps:$4 sm:$0xff]   ;;  %v5166_v45 = vld [vmem:[%s7470_s4 + $0x10] ss:$8 sps:$4 sm:$0xff]  }
  0x9d   :  { %1513 = vmatprep.subr.bf16.mxu1 %v5087_v44  ;;  %v5210_v44 = vld [vmem:[%s7470_s4 + $0x134] ss:$8 sps:$4 sm:$0xff]  }
  0x9f   :  { %1477 = vmatpush1.bf16.msra.mxu0 %v5088_v47  ;;  %v5171_v47 = vld [vmem:[%s7470_s4 + $0x4] ss:$8 sps:$4 sm:$0xff]  }
  0xa0   :  { %1514 = vmatpush1.bf16.msra.mxu1 %v5085_v46  ;;  %1478 = vmatprep.subr.bf16.mxu0 %v5096_v49  ;;  %v5208_v46 = vld [vmem:[%s7470_s4 + $0x130] ss:$8 sps:$4 sm:$0xff]   ;;  %v5169_v49 = vld [vmem:[%s7470_s4] ss:$8 sps:$4 sm:$0xff]  }
  0xa1   :  { %1515 = vmatprep.subr.bf16.mxu1 %v5093_v48  ;;  %v5213_v48 = vld [vmem:[%s7470_s4 + $0x124] ss:$8 sps:$4 sm:$0xff]  }
  0xa3   :  { %1479 = vmatpush2.bf16.msra.mxu0 %v5094_v51  ;;  %v5174_v51 = vld [vmem:[%s7470_s4 + $0xf4] ss:$8 sps:$4 sm:$0xff]  }
  0xa4   :  { %1516 = vmatpush1.bf16.msra.mxu1 %v5091_v50  ;;  %1480 = vmatprep.subr.bf16.mxu0 %v5102_v54  ;;  %v5211_v50 = vld [vmem:[%s7470_s4 + $0x120] ss:$8 sps:$4 sm:$0xff]   ;;  %v5172_v54 = vld [vmem:[%s7470_s4 + $0xf0] ss:$8 sps:$4 sm:$0xff]  }
  0xa5   :  { %1517 = vmatprep.subr.bf16.mxu1 %v5099_v53  ;;  %v5216_v53 = vld [vmem:[%s7470_s4 + $0x114] ss:$8 sps:$4 sm:$0xff]  }
  0xa7   :  { %1481 = vmatpush2.bf16.msra.mxu0 %v5100_v56  ;;  %v5177_v56 = vld [vmem:[%s7470_s4 + $0xe4] ss:$8 sps:$4 sm:$0xff]  }
  0xa8   :  { %1518 = vmatpush1.bf16.msra.mxu1 %v5097_v55  ;;  %1482 = vmatprep.subr.bf16.mxu0 %v5108_v58  ;;  %v5214_v55 = vld [vmem:[%s7470_s4 + $0x110] ss:$8 sps:$4 sm:$0xff]   ;;  %v5175_v58 = vld [vmem:[%s7470_s4 + $0xe0] ss:$8 sps:$4 sm:$0xff]  }
  0xa9   :  { %1519 = vmatprep.subr.bf16.mxu1 %v5105_v57  ;;  %v5219_v57 = vld [vmem:[%s7470_s4 + $0x104] ss:$8 sps:$4 sm:$0xff]  }
  0xab   :  { %1483 = vmatpush2.bf16.msra.mxu0 %v5106_v60  ;;  %v5180_v60 = vld [vmem:[%s7470_s4 + $0xd4] ss:$8 sps:$4 sm:$0xff]  }
  0xac   :  { %1520 = vmatpush2.bf16.msra.mxu1 %v5103_v59  ;;  %1484 = vmatprep.subr.bf16.mxu0 %v5114_v62  ;;  %v5217_v59 = vld [vmem:[%s7470_s4 + $0x100] ss:$8 sps:$4 sm:$0xff]   ;;  %v5178_v62 = vld [vmem:[%s7470_s4 + $0xd0] ss:$8 sps:$4 sm:$0xff]  }
  0xad   :  { %1521 = vmatprep.subr.bf16.mxu1 %v5111_v61  ;;  %v5222_v61 = vld [vmem:[%s7470_s4 + $0x1f4] ss:$8 sps:$4 sm:$0xff]  }
  0xaf   :  { %1485 = vmatpush2.bf16.msra.mxu0 %v5112_v0  ;;  %v5183_v0 = vld [vmem:[%s7470_s4 + $0xc4] ss:$8 sps:$4 sm:$0xff]  }
  0xb0   :  { %1522 = vmatpush2.bf16.msra.mxu1 %v5109_v63  ;;  %1486 = vmatprep.subr.bf16.mxu0 %v5120_v2  ;;  %v5220_v63 = vld [vmem:[%s7470_s4 + $0x1f0] ss:$8 sps:$4 sm:$0xff]   ;;  %v5181_v2 = vld [vmem:[%s7470_s4 + $0xc0] ss:$8 sps:$4 sm:$0xff]  }
  0xb1   :  { %1523 = vmatprep.subr.bf16.mxu1 %v5117_v1  ;;  %v5225_v1 = vld [vmem:[%s7470_s4 + $0x1e4] ss:$8 sps:$4 sm:$0xff]  }
  0xb3   :  { %1487 = vmatpush2.bf16.msra.mxu0 %v5118_v4  ;;  %v5186_v4 = vld [vmem:[%s7470_s4 + $0xb4] ss:$8 sps:$4 sm:$0xff]  }
  0xb4   :  { %1524 = vmatpush2.bf16.msra.mxu1 %v5115_v3  ;;  %1488 = vmatprep.subr.bf16.mxu0 %v5126_v6  ;;  %v5223_v3 = vld [vmem:[%s7470_s4 + $0x1e0] ss:$8 sps:$4 sm:$0xff]   ;;  %v5184_v6 = vld [vmem:[%s7470_s4 + $0xb0] ss:$8 sps:$4 sm:$0xff]  }
  0xb5   :  { %1525 = vmatprep.subr.bf16.mxu1 %v5123_v5  ;;  %v5228_v5 = vld [vmem:[%s7470_s4 + $0x1d4] ss:$8 sps:$4 sm:$0xff]  }
  0xb7   :  { %1489 = vmatpush2.bf16.msra.mxu0 %v5124_v10  ;;  %v5189_v10 = vld [vmem:[%s7470_s4 + $0xa4] ss:$8 sps:$4 sm:$0xff]  }
  0xb8   :  { %1526 = vmatpush2.bf16.msra.mxu1 %v5121_v7  ;;  %1490 = vmatprep.subr.bf16.mxu0 %v5132_v12  ;;  %v5226_v7 = vld [vmem:[%s7470_s4 + $0x1d0] ss:$8 sps:$4 sm:$0xff]   ;;  %v5187_v12 = vld [vmem:[%s7470_s4 + $0xa0] ss:$8 sps:$4 sm:$0xff]  }
  0xb9   :  { %1527 = vmatprep.subr.bf16.mxu1 %v5129_v11  ;;  %v5231_v11 = vld [vmem:[%s7470_s4 + $0x1c4] ss:$8 sps:$4 sm:$0xff]  }
  0xbb   :  { %1491 = vmatpush2.bf16.msra.mxu0 %v5130_v14  ;;  %v5192_v14 = vld [vmem:[%s7470_s4 + $0x94] ss:$8 sps:$4 sm:$0xff]  }
  0xbc   :  { %1528 = vmatpush2.bf16.msra.mxu1 %v5127_v13  ;;  %1492 = vmatprep.subr.bf16.mxu0 %v5138_v17  ;;  %v5229_v13 = vld [vmem:[%s7470_s4 + $0x1c0] ss:$8 sps:$4 sm:$0xff]   ;;  %v5195_v17 = vld [vmem:[%s7470_s4 + $0x84] ss:$8 sps:$4 sm:$0xff]  }
  0xbd   :  { %1529 = vmatprep.subr.bf16.mxu1 %v5135_v15  ;;  %v5190_v15 = vld [vmem:[%s7470_s4 + $0x90] ss:$8 sps:$4 sm:$0xff]  }
  0xbf   :  { %1493 = vmatpush2.bf16.msra.mxu0 %v5136_v21 }
  0xc0   :  { %1530 = vmatpush2.bf16.msra.mxu1 %v5133_v18  ;;  %1558 = vmatprep.subr.bf16.mxu0 %v5144_v23  ;;  %v5193_v18 = vld [vmem:[%s7470_s4 + $0x80] ss:$8 sps:$4 sm:$0xff]  }
  0xc1   :  { %1531 = vmatprep.subr.bf16.mxu1 %v5141_v22 }
  0xc2   :  { %1495 = vmatmul.mubr.bf16.vlgmr.msra.gmra.mxu0 %v5993_v9  ;;  %v5151_v9 = vld [vmem:[%s7470_s4 + $0x60] ss:$8 sps:$4 sm:$0xff]  }
  0xc3   :  { %1559 = vmatpush1.bf16.msra.mxu0 %v5142_v25  ;;  %1576 = vmatprep.mubr.bf16.mxu0 %v5706_v16  ;;  %v5234_v25 = vld [vmem:[%s7470_s4 + $0x1b4] ss:$8 sps:$4 sm:$0xff]  }
  0xc4   :  { %1532 = vmatpush2.bf16.msra.mxu1 %v5139_v24  ;;  %1989 = vmatprep.subr.bf16.mxu0 %v5150_v27 }
  0xc5   :  { %1533 = vmatprep.subr.bf16.mxu1 %v5147_v26  ;;  %v5232_v26 = vld [vmem:[%s7470_s4 + $0x1b0] ss:$8 sps:$4 sm:$0xff]  }
  0xc8   :  { %1534 = vmatpush2.bf16.msra.mxu1 %v5145_v28 }
  0xca   :  { %4477 = vmatmul.mubr.msk.bf16.vlgmr.msra.gmra.mxu0 %vm1253_vm0, %v6022_v19  ;;  %v5196_v19 = vld [vmem:[%s7470_s4 + $0x170] ss:$8 sps:$4 sm:$0xff]  }
  0xcb   :  { %1536 = vmatmul.mubr.bf16.vlgmr.msra.gmra.mxu1 %v6204_v20  ;;  %1990 = vmatpush1.bf16.msra.mxu0 %v5148_v29  ;;  %v5198_v20 = vld [vmem:[%s7470_s4 + $0x174] ss:$8 sps:$4 sm:$0xff]  }
  0xcc   :  { %1991 = vmatprep.subr.bf16.mxu0 %v5153_v30  ;;  %2030 = vmatprep.subr.bf16.mxu1 %v5198_v20  ;;  %v5238_v20 = vld [vmem:[%s7470_s4 + $0x190] ss:$8 sps:$4 sm:$0xff]  }
  0xcd   :  { %2031 = vmatpush1.bf16.msra.mxu1 %v5196_v19  ;;  %v5240_v19 = vld [vmem:[%s7470_s4 + $0x194] ss:$8 sps:$4 sm:$0xff]  }
  0xce   :  { %2032 = vmatprep.subr.bf16.mxu1 %v5201_v33 }
  0xcf   :  { %1992 = vmatpush1.bf16.msra.mxu0 %v5151_v9  ;;  %v5237_v9 = vld [vmem:[%s7470_s4 + $0x1a4] ss:$8 sps:$4 sm:$0xff]  }
  0xd0   :  { %1993 = vmatprep.subr.bf16.mxu0 %v5156_v31  ;;  %v5235_v31 = vld [vmem:[%s7470_s4 + $0x1a0] ss:$8 sps:$4 sm:$0xff]  }
  0xd1   :  { %2033 = vmatpush1.bf16.msra.mxu1 %v5199_v35 }
  0xd2   :  { %2034 = vmatprep.subr.bf16.mxu1 %v5204_v37 }
  0xd3   :  { %1994 = vmatpush1.bf16.msra.mxu0 %v5154_v32 }
  0xd4   :  { %1995 = vmatprep.subr.bf16.mxu0 %v5159_v52 }
  0xd5   :  { %2035 = vmatpush1.bf16.msra.mxu1 %v5202_v39 }
  0xd6   :  { %2036 = vmatprep.subr.bf16.mxu1 %v5207_v40 }
  0xd7   :  { %1996 = vmatpush1.bf16.msra.mxu0 %v5157_v34 }
  0xd8   :  { %1997 = vmatprep.subr.bf16.mxu0 %v5162_v8 }
  0xd9   :  { %2037 = vmatpush1.bf16.msra.mxu1 %v5205_v42 }
  0xda   :  { %2038 = vmatprep.subr.bf16.mxu1 %v5210_v44 }
  0xdb   :  { %1998 = vmatpush1.bf16.msra.mxu0 %v5160_v38 }
  0xdc   :  { %1999 = vmatprep.subr.bf16.mxu0 %v5165_v36 }
  0xdd   :  { %2039 = vmatpush1.bf16.msra.mxu1 %v5208_v46 }
  0xde   :  { %2040 = vmatprep.subr.bf16.mxu1 %v5213_v48 }
  0xdf   :  { %2000 = vmatpush1.bf16.msra.mxu0 %v5163_v41 }
  0xe0   :  { %2001 = vmatprep.subr.bf16.mxu0 %v5168_v43 }
  0xe1   :  { %2041 = vmatpush1.bf16.msra.mxu1 %v5211_v50 }
  0xe2   :  { %2042 = vmatprep.subr.bf16.mxu1 %v5216_v53 }
  0xe3   :  { %2002 = vmatpush1.bf16.msra.mxu0 %v5166_v45 }
  0xe4   :  { %2003 = vmatprep.subr.bf16.mxu0 %v5171_v47 }
  0xe5   :  { %2043 = vmatpush1.bf16.msra.mxu1 %v5214_v55 }
  0xe6   :  { %2044 = vmatprep.subr.bf16.mxu1 %v5219_v57 }
  0xe7   :  { %2004 = vmatpush1.bf16.msra.mxu0 %v5169_v49 }
  0xe8   :  { %2005 = vmatprep.subr.bf16.mxu0 %v5174_v51 }
  0xe9   :  { %2045 = vmatpush1.bf16.msra.mxu1 %v5217_v59 }
  0xea   :  { %2046 = vmatprep.subr.bf16.mxu1 %v5222_v61 }
  0xeb   :  { %2006 = vmatpush2.bf16.msra.mxu0 %v5172_v54 }
  0xec   :  { %2007 = vmatprep.subr.bf16.mxu0 %v5177_v56 }
  0xed   :  { %2047 = vmatpush2.bf16.msra.mxu1 %v5220_v63 }
  0xee   :  { %2048 = vmatprep.subr.bf16.mxu1 %v5225_v1 }
  0xef   :  { %2008 = vmatpush2.bf16.msra.mxu0 %v5175_v58 }
  0xf0   :  { %2009 = vmatprep.subr.bf16.mxu0 %v5180_v60 }
  0xf1   :  { %2049 = vmatpush2.bf16.msra.mxu1 %v5223_v3 }
  0xf2   :  { %2050 = vmatprep.subr.bf16.mxu1 %v5228_v5 }
  0xf3   :  { %2010 = vmatpush2.bf16.msra.mxu0 %v5178_v62 }
  0xf4   :  { %2011 = vmatprep.subr.bf16.mxu0 %v5183_v0 }
  0xf5   :  { %2051 = vmatpush2.bf16.msra.mxu1 %v5226_v7 }
  0xf6   :  { %2052 = vmatprep.subr.bf16.mxu1 %v5231_v11 }
  0xf7   :  { %2012 = vmatpush2.bf16.msra.mxu0 %v5181_v2 }
  0xf8   :  { %2013 = vmatprep.subr.bf16.mxu0 %v5186_v4 }
  0xf9   :  { %2053 = vmatpush2.bf16.msra.mxu1 %v5229_v13 }
  0xfa   :  { %2054 = vmatprep.subr.bf16.mxu1 %v5234_v25 }
  0xfb   :  { %2014 = vmatpush2.bf16.msra.mxu0 %v5184_v6 }
  0xfc   :  { %2015 = vmatprep.subr.bf16.mxu0 %v5189_v10 }
  0xfd   :  { %2055 = vmatpush2.bf16.msra.mxu1 %v5232_v26 }
  0xfe   :  { %2056 = vmatprep.subr.bf16.mxu1 %v5237_v9 }
  0xff   :  { %2016 = vmatpush2.bf16.msra.mxu0 %v5187_v12 }
 0x100   :  { %2017 = vmatprep.subr.bf16.mxu0 %v5192_v14 }
 0x101   :  { %2057 = vmatpush2.bf16.msra.mxu1 %v5235_v31 }
 0x102   :  { %v1291_v21 = vpop.f32.mrf.mxu0  ;;  %2058 = vmatprep.subr.bf16.mxu1 %v5240_v19 }
 0x103   :  { %v1332_v22 = vpop.f32.mrf.mxu1  ;;  %2018 = vmatpush2.bf16.msra.mxu0 %v5190_v15 }
 0x104   :  { %v1293_v23 = vpop.f32.mrf.mxu0  ;;  %2019 = vmatprep.subr.bf16.mxu0 %v5195_v17 }
 0x105   :  { %v1334_v24 = vpop.f32.mrf.mxu1 }
 0x106   :  { %v1295_v27 = vpop.f32.mrf.mxu0 }
 0x107   :  { %v1336_v28 = vpop.f32.mrf.mxu1  ;;  %2020 = vmatpush2.bf16.msra.mxu0 %v5193_v18 }
 0x108   :  { %v1296_v29 = vpop.f32.mrf.mxu0 }
 0x109   :  { %v1337_v30 = vpop.f32.mrf.mxu1 }
 0x10b   :  { %v1414_v32 = vpop.f32.mrf.mxu1 }
 0x10d   :  { %v1416_v52 = vpop.f32.mrf.mxu1 }
 0x10f   :  { %v1418_v33 = vpop.f32.mrf.mxu1 }
 0x110   :  { %19 = vsyncpa [#allocation5], 0  ;;  %2059 = vmatpush2.bf16.msra.mxu1 %v5238_v20  ;;  %v5243_v35 = vld [vmem:[%s7470_s4 + $0x184] ss:$8 sps:$4 sm:$0xff]   ;;  %v5241_v8 = vld [vmem:[%s7470_s4 + $0x180] ss:$8 sps:$4 sm:$0xff]   ;;  %v253_v37 = vlaneseq }
 0x111   :  { %v1419_v34 = vpop.f32.mrf.mxu1  ;;  %2060 = vmatprep.subr.bf16.mxu1 %v5243_v35  ;;  %v251_v39 = vld [vmem:[%s7469_s3] sm:$0xf]  ;;  %v5247_v19 = vld [vmem:[%s7472_s6 + $0xe8] ss:$16 sps:$4 sm:$0xff]   ;;  %v5249_v20 = vld [vmem:[%s7472_s6 + $0xec] ss:$16 sps:$4 sm:$0xff]  }
 0x112   :  { %v6608_v38 = vshrl.u32 %v253_v37, 7  ;;  %v5252_v33 = vld [vmem:[%s7472_s6 + $0xc4] ss:$16 sps:$4 sm:$0xff]   ;;  %v5255_v34 = vld [vmem:[%s7472_s6 + $0xcc] ss:$16 sps:$4 sm:$0xff]   ;;  %vm4236_vm1 = vcmask 162816  }
 0x113   :  { %v5250_v35 = vld [vmem:[%s7472_s6 + $0xc0] ss:$16 sps:$4 sm:$0xff]   ;;  %v5261_v37 = vld [vmem:[%s7472_s6 + $0xac] ss:$16 sps:$4 sm:$0xff]  }
 0x114   :  { %2061 = vmatpush2.bf16.msra.mxu1 %v5241_v8  ;;  %v6611_v36 = vsub.s32 0, %v6608_v38  ;;  %v6617_v40 = vsub.s32 1, %v6608_v38  ;;  %v6623_v0 = vsub.s32 2, %v6608_v38  ;;  %v6626_v1 = vsub.s32 3, %v6608_v38  ;;  %v5253_v8 = vld [vmem:[%s7472_s6 + $0xc8] ss:$16 sps:$4 sm:$0xff]  }
 0x115   :  { %2333 = vmatprep.subr.bf16.mxu1 %v5249_v20  ;;  %v5306_v20 = vld [vmem:[%s7474_s8 + $0x11c] ss:$28 sps:$4 sm:$0xff]  }
 0x116   :  { %v256_v41 = vrot.slane %v251_v39, %v6611_v36  ;;  %v260_v42 = vrot.slane %v251_v39, %v6617_v40  ;;  %v264_v3 = vrot.slane %v251_v39, %v6623_v0  ;;  %v268_v5 = vrot.slane %v251_v39, %v6626_v1  ;;  %v5256_v39 = vld [vmem:[%s7472_s6 + $0xa0] ss:$16 sps:$4 sm:$0xff]  }
 0x118   :  { %v1292_v43 = vadd.f32 %v1291_v21, %v256_v41  ;;  %v1294_v44 = vadd.f32 %v1293_v23, %v260_v42  ;;  %v5259_v41 = vld [vmem:[%s7472_s6 + $0xa8] ss:$16 sps:$4 sm:$0xff]   ;;  %v5264_v42 = vld [vmem:[%s7472_s6 + $0x84] ss:$16 sps:$4 sm:$0xff]  }
 0x11a   :  { %v1333_v45 = vadd.f32 %v1332_v22, %v1292_v43  ;;  %v1335_v47 = vadd.f32 %v1334_v24, %v1294_v44  ;;  %v5267_v43 = vld [vmem:[%s7472_s6 + $0x8c] ss:$16 sps:$4 sm:$0xff]   ;;  %v5262_v44 = vld [vmem:[%s7472_s6 + $0x80] ss:$16 sps:$4 sm:$0xff]  }
 0x142   :  { %v1373_v46 = vpop.f32.mrf.mxu0 }
 0x143   :  { %v1374_v48 = vadd.f32 %v1373_v46, %v1333_v45  ;;  %v5265_v45 = vld [vmem:[%s7472_s6 + $0x88] ss:$16 sps:$4 sm:$0xff]   ;;  %v5270_v46 = vld [vmem:[%s7472_s6 + $0x64] ss:$16 sps:$4 sm:$0xff]  }
 0x144   :  { %v1375_v49 = vpop.f32.mrf.mxu0 }
 0x145   :  { %v1415_v50 = vadd.f32 %v1414_v32, %v1374_v48  ;;  %v1376_v51 = vadd.f32 %v1375_v49, %v1335_v47  ;;  %v5244_v32 = vld [vmem:[%s7472_s6 + $0xe0] ss:$16 sps:$4 sm:$0xff]   ;;  %v5271_v48 = vld [vmem:[%s7472_s6 + $0x68] ss:$16 sps:$4 sm:$0xff]   ;;  %v5273_v49 = vld [vmem:[%s7472_s6 + $0x6c] ss:$16 sps:$4 sm:$0xff]  }
 0x146   :  { %v1377_v53 = vpop.f32.mrf.mxu0  ;;  %v5268_v47 = vld [vmem:[%s7472_s6 + $0x60] ss:$16 sps:$4 sm:$0xff]  }
 0x147   :  { %v1417_v54 = vadd.f32 %v1416_v52, %v1376_v51  ;;  %v1585_v55 = vmax.f32 %v1415_v50, 0.0  ;;  %v5246_v52 = vld [vmem:[%s7472_s6 + $0xe4] ss:$16 sps:$4 sm:$0xff]   ;;  %v5279_v51 = vld [vmem:[%s7472_s6 + $0x4c] ss:$16 sps:$4 sm:$0xff]  }
 0x148   :  { %v1378_v56 = vpop.f32.mrf.mxu0  ;;  %2292 = vmatprep.subr.bf16.mxu0 %v5246_v52  ;;  %v5276_v50 = vld [vmem:[%s7472_s6 + $0x44] ss:$16 sps:$4 sm:$0xff]   ;;  %v5274_v53 = vld [vmem:[%s7472_s6 + $0x40] ss:$16 sps:$4 sm:$0xff]  }
 0x149   :  { %v1586_v57 = vmax.f32 %v1417_v54, 0.0  ;;  %v1589_v60 = vpack.c.bf16 %v1585_v55, %v1585_v55  ;;  %v5277_v54 = vld [vmem:[%s7472_s6 + $0x48] ss:$16 sps:$4 sm:$0xff]   ;;  %v5282_v55 = vld [vmem:[%s7472_s6 + $0x24] ss:$16 sps:$4 sm:$0xff]  }
 0x14a   :  { %v5285_v56 = vld [vmem:[%s7472_s6 + $0x2c] ss:$16 sps:$4 sm:$0xff]  }
 0x14b   :  { %v1455_v58 = vpop.f32.mrf.mxu1  ;;  %v1590_v59 = vpack.c.bf16 %v1586_v57, %v1586_v57  ;;  %v5280_v57 = vld [vmem:[%s7472_s6 + $0x20] ss:$16 sps:$4 sm:$0xff]  }
 0x14c   :  { %v1456_v7 = vadd.f32 %v1455_v58, %v264_v3  ;;  %v5283_v58 = vld [vmem:[%s7472_s6 + $0x28] ss:$16 sps:$4 sm:$0xff]   ;;  %v5298_v52 = vld [vmem:[%s7474_s8 + $0x150] ss:$28 sps:$4 sm:$0xff]  }
 0x14d   :  { %v1457_v61 = vpop.f32.mrf.mxu1  ;;  %2021 = vmatprep.mubr.bf16.mxu0 %v1590_v59  ;;  %v5288_v59 = vld [vmem:[%s7472_s6 + $0x4] ss:$16 sps:$4 sm:$0xff]  }
 0x14e   :  { %2022 = vmatmul.mubr.bf16.vlgmr.msra.gmra.mxu0 %v1589_v60  ;;  %v1458_v11 = vadd.f32 %v1457_v61, %v268_v5  ;;  %v5291_v60 = vld [vmem:[%s7472_s6 + $0xc] ss:$16 sps:$4 sm:$0xff]   ;;  %v5286_v61 = vld [vmem:[%s7472_s6] ss:$16 sps:$4 sm:$0xff]  }
 0x14f   :  { %v1459_v62 = vpop.f32.mrf.mxu1  ;;  %2324 = vmatprep.mubr.bf16.mxu0 %v5706_v16  ;;  %2293 = vmatpush1.bf16.msra.mxu0 %v5244_v32  ;;  %v5303_v32 = vld [vmem:[%s7474_s8 + $0x4d4] ss:$28 sps:$4 sm:$0xff]  }
 0x150   :  { %2294 = vmatprep.subr.bf16.mxu0 %v5252_v33  ;;  %v5289_v62 = vld [vmem:[%s7472_s6 + $0x8] ss:$16 sps:$4 sm:$0xff]  }
 0x151   :  { %v1460_v63 = vpop.f32.mrf.mxu1  ;;  %v5309_v33 = vld [vmem:[%s7474_s8 + $0x49c] ss:$28 sps:$4 sm:$0xff]  }
 0x152   :  { %v5294_v63 = vld [vmem:[%s7474_s8 + $0x18c] ss:$28 sps:$4 sm:$0xff]  }
 0x153   :  { %2295 = vmatpush1.bf16.msra.mxu0 %v5250_v35  ;;  %v5307_v35 = vld [vmem:[%s7474_s8 + $0x498] ss:$28 sps:$4 sm:$0xff]  }
 0x182   :  { %v1496_v2 = vpop.f32.mrf.mxu0 }
 0x183   :  { %v1497_v12 = vadd.f32 %v1496_v2, %v1456_v7  ;;  %v5297_v2 = vld [vmem:[%s7474_s8 + $0x50c] ss:$28 sps:$4 sm:$0xff]   ;;  %v1657_v7 = vld [vmem:[%s7471_s5] sm:$0x3] }
 0x184   :  { %v1498_v4 = vpop.f32.mrf.mxu0 }
 0x185   :  { %v1499_v15 = vadd.f32 %v1498_v4, %v1458_v11  ;;  %v1666_v11 = vrot.slane %v1657_v7, %v6617_v40 }
 0x186   :  { %v1500_v6 = vpop.f32.mrf.mxu0 }
 0x188   :  { %v1501_v10 = vpop.f32.mrf.mxu0 }
 0x189   :  { %v1662_v10 = vrot.slane %v1657_v7, %v6611_v36  ;;  %v5355_v7 = vld [vmem:[%s7474_s8 + $0x658] ss:$28 sps:$4 sm:$0xff]  }
 0x18a   :  { %v1578_v14 = vpop.f32.mrf.mxu0 }
 0x18b   :  { %v1537_v13 = vpop.f32.mrf.mxu1 }
 0x18c   :  { %v1538_v17 = vadd.f32 %v1537_v13, %v1497_v12  ;;  %v1580_v21 = vpop.f32.mrf.mxu0 }
 0x18d   :  { %v1539_v18 = vpop.f32.mrf.mxu1 }
 0x18e   :  { %v1579_v22 = vadd.f32 %v1578_v14, %v1538_v17  ;;  %v1540_v23 = vadd.f32 %v1539_v18, %v1499_v15  ;;  %v1582_v25 = vpop.f32.mrf.mxu0 }
 0x18f   :  { %v1541_v24 = vpop.f32.mrf.mxu1  ;;  %v2071_v25 = vld [vmem:[%s7467_s1] sm:$0xff] }
 0x190   :  { %v1581_v26 = vadd.f32 %v1580_v21, %v1540_v23  ;;  %v1587_v27 = vmax.f32 %v1579_v22, 0.0  ;;  %v1583_v29 = vpop.f32.mrf.mxu0 }
 0x191   :  { %v1542_v28 = vpop.f32.mrf.mxu1  ;;  %v5292_v29 = vld [vmem:[%s7474_s8 + $0x188] ss:$28 sps:$4 sm:$0xff]  }
 0x192   :  { %v1588_v30 = vmax.f32 %v1581_v26, 0.0  ;;  %v1591_v31 = vpack.c.bf16 %v1587_v27, %v1587_v27 }
 0x194   :  { %v1592_v9 = vpack.c.bf16 %v1588_v30, %v1588_v30  ;;  %v5295_v30 = vld [vmem:[%s7474_s8 + $0x508] ss:$28 sps:$4 sm:$0xff]  }
 0x196   :  { %2062 = vmatprep.mubr.bf16.mxu1 %v1592_v9 }
 0x197   :  { %2063 = vmatmul.mubr.bf16.vlgmr.msra.gmra.mxu1 %v1591_v31  ;;  %v5300_v31 = vld [vmem:[%s7474_s8 + $0x154] ss:$28 sps:$4 sm:$0xff]  }
 0x198   :  { %2334 = vmatpush1.bf16.msra.mxu1 %v5247_v19  ;;  %2365 = vmatprep.mubr.bf16.mxu1 %v5706_v16  ;;  %v5258_v16 = vld [vmem:[%s7472_s6 + $0xa4] ss:$16 sps:$4 sm:$0xff]   ;;  %v5301_v19 = vld [vmem:[%s7474_s8 + $0x4d0] ss:$28 sps:$4 sm:$0xff]  }
 0x199   :  { %2335 = vmatprep.subr.bf16.mxu1 %v5255_v34  ;;  %2296 = vmatprep.subr.bf16.mxu0 %v5258_v16  ;;  %v5304_v34 = vld [vmem:[%s7474_s8 + $0x118] ss:$28 sps:$4 sm:$0xff]   ;;  %v5315_v16 = vld [vmem:[%s7474_s8 + $0x464] ss:$28 sps:$4 sm:$0xff]  }
 0x19a   :  { %2297 = vmatpush1.bf16.msra.mxu0 %v5256_v39  ;;  %v5313_v39 = vld [vmem:[%s7474_s8 + $0x460] ss:$28 sps:$4 sm:$0xff]  }
 0x19b   :  { %2298 = vmatprep.subr.bf16.mxu0 %v5264_v42  ;;  %v5321_v42 = vld [vmem:[%s7474_s8 + $0x42c] ss:$28 sps:$4 sm:$0xff]  }
 0x19c   :  { %2336 = vmatpush1.bf16.msra.mxu1 %v5253_v8  ;;  %v5312_v8 = vld [vmem:[%s7474_s8 + $0xe4] ss:$28 sps:$4 sm:$0xff]  }
 0x19d   :  { %2337 = vmatprep.subr.bf16.mxu1 %v5261_v37  ;;  %v5310_v37 = vld [vmem:[%s7474_s8 + $0xe0] ss:$28 sps:$4 sm:$0xff]  }
 0x19e   :  { %2299 = vmatpush1.bf16.msra.mxu0 %v5262_v44  ;;  %v5319_v44 = vld [vmem:[%s7474_s8 + $0x428] ss:$28 sps:$4 sm:$0xff]  }
 0x19f   :  { %2300 = vmatprep.subr.bf16.mxu0 %v5270_v46  ;;  %v5327_v46 = vld [vmem:[%s7474_s8 + $0x3f4] ss:$28 sps:$4 sm:$0xff]  }
 0x1a0   :  { %2338 = vmatpush1.bf16.msra.mxu1 %v5259_v41  ;;  %v5318_v41 = vld [vmem:[%s7474_s8 + $0xac] ss:$28 sps:$4 sm:$0xff]  }
 0x1a1   :  { %2339 = vmatprep.subr.bf16.mxu1 %v5267_v43  ;;  %v5316_v43 = vld [vmem:[%s7474_s8 + $0xa8] ss:$28 sps:$4 sm:$0xff]  }
 0x1a2   :  { %2301 = vmatpush1.bf16.msra.mxu0 %v5268_v47  ;;  %v5322_v47 = vld [vmem:[%s7474_s8 + $0x70] ss:$28 sps:$4 sm:$0xff]  }
 0x1a3   :  { %2302 = vmatprep.subr.bf16.mxu0 %v5276_v50  ;;  %v5333_v50 = vld [vmem:[%s7474_s8 + $0x3bc] ss:$28 sps:$4 sm:$0xff]  }
 0x1a4   :  { %2340 = vmatpush1.bf16.msra.mxu1 %v5265_v45  ;;  %v5324_v45 = vld [vmem:[%s7474_s8 + $0x74] ss:$28 sps:$4 sm:$0xff]  }
 0x1a5   :  { %2341 = vmatprep.subr.bf16.mxu1 %v5273_v49  ;;  %v5330_v49 = vld [vmem:[%s7474_s8 + $0x3c] ss:$28 sps:$4 sm:$0xff]  }
 0x1a6   :  { %2303 = vmatpush1.bf16.msra.mxu0 %v5274_v53  ;;  %v5331_v53 = vld [vmem:[%s7474_s8 + $0x3b8] ss:$28 sps:$4 sm:$0xff]  }
 0x1a7   :  { %2304 = vmatprep.subr.bf16.mxu0 %v5282_v55  ;;  %v5339_v55 = vld [vmem:[%s7474_s8 + $0x384] ss:$28 sps:$4 sm:$0xff]  }
 0x1a8   :  { %2342 = vmatpush1.bf16.msra.mxu1 %v5271_v48  ;;  %v5325_v48 = vld [vmem:[%s7474_s8 + $0x3f0] ss:$28 sps:$4 sm:$0xff]  }
 0x1a9   :  { %2343 = vmatprep.subr.bf16.mxu1 %v5279_v51  ;;  %v5328_v51 = vld [vmem:[%s7474_s8 + $0x38] ss:$28 sps:$4 sm:$0xff]  }
 0x1aa   :  { %2305 = vmatpush1.bf16.msra.mxu0 %v5280_v57  ;;  %v5337_v57 = vld [vmem:[%s7474_s8 + $0x380] ss:$28 sps:$4 sm:$0xff]  }
 0x1ab   :  { %2306 = vmatprep.subr.bf16.mxu0 %v5288_v59  ;;  %v5345_v59 = vld [vmem:[%s7474_s8 + $0x6cc] ss:$28 sps:$4 sm:$0xff]  }
 0x1ac   :  { %2344 = vmatpush1.bf16.msra.mxu1 %v5277_v54  ;;  %v5336_v54 = vld [vmem:[%s7474_s8 + $0x4] ss:$28 sps:$4 sm:$0xff]  }
 0x1ad   :  { %2345 = vmatprep.subr.bf16.mxu1 %v5285_v56  ;;  %v5334_v56 = vld [vmem:[%s7474_s8] ss:$28 sps:$4 sm:$0xff]  }
 0x1ae   :  { %2307 = vmatpush1.bf16.msra.mxu0 %v5286_v61  ;;  %v5343_v61 = vld [vmem:[%s7474_s8 + $0x6c8] ss:$28 sps:$4 sm:$0xff]  }
 0x1af   :  { %3827 = vmatprep.subr.bf16.mxu0 %v5294_v63  ;;  %v5351_v63 = vld [vmem:[%s7474_s8 + $0x694] ss:$28 sps:$4 sm:$0xff]  }
 0x1b0   :  { %2346 = vmatpush1.bf16.msra.mxu1 %v5283_v58  ;;  %v5342_v58 = vld [vmem:[%s7474_s8 + $0x34c] ss:$28 sps:$4 sm:$0xff]  }
 0x1b1   :  { %2347 = vmatprep.subr.bf16.mxu1 %v5291_v60  ;;  %v5340_v60 = vld [vmem:[%s7474_s8 + $0x348] ss:$28 sps:$4 sm:$0xff]  }
 0x1b4   :  { %2348 = vmatpush1.bf16.msra.mxu1 %v5289_v62  ;;  %v5348_v62 = vld [vmem:[%s7474_s8 + $0x314] ss:$28 sps:$4 sm:$0xff]  }
 0x1b5   :  { %3868 = vmatprep.subr.bf16.mxu1 %v5297_v2  ;;  %v5346_v2 = vld [vmem:[%s7474_s8 + $0x310] ss:$28 sps:$4 sm:$0xff]  }
 0x20e   :  { %v2023_v3 = vpop.f32.mrf.mxu0 }
 0x20f   :  { %v2024_v12 = vadd.f32 %v2023_v3, %v1662_v10  ;;  %v5349_v3 = vld [vmem:[%s7474_s8 + $0x690] ss:$28 sps:$4 sm:$0xff]   ;;  %v5360_v10 = vld [vmem:[%s7474_s8 + $0x2a4] ss:$28 sps:$4 sm:$0xff]  }
 0x210   :  { %v2025_v4 = vpop.f32.mrf.mxu0 }
 0x211   :  { %v2026_v14 = vadd.f32 %v2025_v4, %v1666_v11  ;;  %v5354_v4 = vld [vmem:[%s7474_s8 + $0x2dc] ss:$28 sps:$4 sm:$0xff]   ;;  %v5363_v11 = vld [vmem:[%s7474_s8 + $0x624] ss:$28 sps:$4 sm:$0xff]  }
 0x212   :  { %v2027_v5 = vpop.f32.mrf.mxu0 }
 0x213   :  { %v5357_v5 = vld [vmem:[%s7474_s8 + $0x65c] ss:$28 sps:$4 sm:$0xff]  }
 0x214   :  { %v2028_v6 = vpop.f32.mrf.mxu0 }
 0x215   :  { %v5352_v6 = vld [vmem:[%s7474_s8 + $0x2d8] ss:$28 sps:$4 sm:$0xff]  }
 0x257   :  { %v2064_v13 = vpop.f32.mrf.mxu1 }
 0x258   :  { %v2065_v15 = vadd.f32 %v2064_v13, %v2024_v12  ;;  %v5358_v12 = vld [vmem:[%s7474_s8 + $0x2a0] ss:$28 sps:$4 sm:$0xff]  }
 0x259   :  { %v2066_v17 = vpop.f32.mrf.mxu1  ;;  %v5361_v13 = vld [vmem:[%s7474_s8 + $0x620] ss:$28 sps:$4 sm:$0xff]  }
 0x25a   :  { %v2067_v18 = vadd.f32 %v2066_v17, %v2026_v14  ;;  %4237 = vst.msk [vmem:[#allocation4] sm:$0xff] %vm4236_vm1, %v2065_v15  ;;  %v5366_v14 = vld [vmem:[%s7474_s8 + $0x26c] ss:$28 sps:$4 sm:$0xff]  }
 0x25b   :  { %v2068_v21 = vpop.f32.mrf.mxu1  ;;  %v5364_v17 = vld [vmem:[%s7474_s8 + $0x268] ss:$28 sps:$4 sm:$0xff]  }
 0x25c   :  { %v2072_v22 = vmul.f32 0.5, %v2067_v18  ;;  %4238 = vst.msk [vmem:[#allocation6] sm:$0xff] %vm4236_vm1, %v2067_v18  ;;  %v5367_v18 = vld [vmem:[%s7474_s8 + $0x5e8] ss:$28 sps:$4 sm:$0xff]   ;;  %v5372_v21 = vld [vmem:[%s7474_s8 + $0x234] ss:$28 sps:$4 sm:$0xff]  }
 0x25d   :  { %v2069_v23 = vpop.f32.mrf.mxu1 }
 0x25e   :  { %v2073_v24 = vmul.f32 1.442695, %v2072_v22  ;;  %v5375_v22 = vld [vmem:[%s7474_s8 + $0x5b4] ss:$28 sps:$4 sm:$0xff]  }
 0x25f   :  { %v5370_v23 = vld [vmem:[%s7474_s8 + $0x230] ss:$28 sps:$4 sm:$0xff]  }
 0x260   :  { %5612 = vpow2.f32 %v2073_v24  ;;  %v5373_v24 = vld [vmem:[%s7474_s8 + $0x5b0] ss:$28 sps:$4 sm:$0xff]  }
 0x26d   :  { %v5613_v26 = vpop.eup %5612 }
 0x26e   :  { %v2075_v27 = vmul.f32 %v5613_v26, %v2071_v25  ;;  %v5378_v25 = vld [vmem:[%s7474_s8 + $0x1fc] ss:$28 sps:$4 sm:$0xff]  }
 0x26f   :  { %v5381_v26 = vld [vmem:[%s7474_s8 + $0x57c] ss:$28 sps:$4 sm:$0xff]  }
 0x270   :  { %v2076_v28 = vadd.f32 %v2075_v27, %v2065_v15  ;;  %v5369_v15 = vld [vmem:[%s7474_s8 + $0x5ec] ss:$28 sps:$4 sm:$0xff]   ;;  %v5376_v27 = vld [vmem:[%s7474_s8 + $0x1f8] ss:$28 sps:$4 sm:$0xff]  }
 0x272   :  { %v2077_v9 = vpack.c.bf16 %v2076_v28, %v2076_v28  ;;  %v5379_v28 = vld [vmem:[%s7474_s8 + $0x578] ss:$28 sps:$4 sm:$0xff]  }
 0x274   :  { %2325 = vmatmul.mubr.bf16.vlgmr.msra.gmra.mxu0 %v2077_v9  ;;  %2366 = vmatmul.mubr.bf16.vlgmr.msra.gmra.mxu1 %v2077_v9  ;;  %v5382_v9 = vld [vmem:[%s7474_s8 + $0x1c0] ss:$28 sps:$4 sm:$0xff]  }
 0x275   :  { %3828 = vmatpush1.bf16.msra.mxu0 %v5292_v29  ;;  %3869 = vmatpush1.bf16.msra.mxu1 %v5295_v30  ;;  %v5384_v29 = vld [vmem:[%s7474_s8 + $0x1c4] ss:$28 sps:$4 sm:$0xff]  }
 0x276   :  { %3829 = vmatprep.subr.bf16.mxu0 %v5300_v31  ;;  %3870 = vmatprep.subr.bf16.mxu1 %v5303_v32  ;;  %v5387_v30 = vld [vmem:[%s7474_s8 + $0x544] ss:$28 sps:$4 sm:$0xff]   ;;  %v5390_v32 = vld [vmem:[%s7474_s8 + $0x194] ss:$28 sps:$4 sm:$0xff]  }
 0x277   :  { %v5385_v31 = vld [vmem:[%s7474_s8 + $0x540] ss:$28 sps:$4 sm:$0xff]  }
 0x279   :  { %3830 = vmatpush1.bf16.msra.mxu0 %v5298_v52  ;;  %3871 = vmatpush1.bf16.msra.mxu1 %v5301_v19  ;;  %v5393_v52 = vld [vmem:[%s7474_s8 + $0x514] ss:$28 sps:$4 sm:$0xff]   ;;  %v2110_v19 = vld [vmem:[%s7473_s7] sm:$0xf] }
 0x27a   :  { %3831 = vmatprep.subr.bf16.mxu0 %v5306_v20  ;;  %3872 = vmatprep.subr.bf16.mxu1 %v5309_v33  ;;  %v2115_v20 = vrot.slane %v2110_v19, %v6611_v36  ;;  %v2123_v33 = vrot.slane %v2110_v19, %v6623_v0 }
 0x27d   :  { %3832 = vmatpush1.bf16.msra.mxu0 %v5304_v34  ;;  %3873 = vmatpush1.bf16.msra.mxu1 %v5307_v35  ;;  %v2119_v34 = vrot.slane %v2110_v19, %v6617_v40  ;;  %v2127_v35 = vrot.slane %v2110_v19, %v6626_v1  ;;  %v5444_v19 = vld [vmem:[%s7474_s8 + $0x31c] ss:$28 sps:$4 sm:$0xff]  }
 0x27e   :  { %3833 = vmatprep.subr.bf16.mxu0 %v5312_v8  ;;  %3874 = vmatprep.subr.bf16.mxu1 %v5315_v16 }
 0x281   :  { %3834 = vmatpush1.bf16.msra.mxu0 %v5310_v37  ;;  %3875 = vmatpush1.bf16.msra.mxu1 %v5313_v39 }
 0x282   :  { %3835 = vmatprep.subr.bf16.mxu0 %v5318_v41  ;;  %3876 = vmatprep.subr.bf16.mxu1 %v5321_v42 }
 0x285   :  { %3836 = vmatpush1.bf16.msra.mxu0 %v5316_v43  ;;  %3877 = vmatpush1.bf16.msra.mxu1 %v5319_v44 }
 0x286   :  { %3837 = vmatprep.subr.bf16.mxu0 %v5324_v45  ;;  %3878 = vmatprep.subr.bf16.mxu1 %v5327_v46 }
 0x289   :  { %3838 = vmatpush1.bf16.msra.mxu0 %v5322_v47  ;;  %3879 = vmatpush1.bf16.msra.mxu1 %v5325_v48 }
 0x28a   :  { %3839 = vmatprep.subr.bf16.mxu0 %v5330_v49  ;;  %3880 = vmatprep.subr.bf16.mxu1 %v5333_v50 }
 0x28d   :  { %3840 = vmatpush1.bf16.msra.mxu0 %v5328_v51  ;;  %3881 = vmatpush1.bf16.msra.mxu1 %v5331_v53 }
 0x28e   :  { %3841 = vmatprep.subr.bf16.mxu0 %v5336_v54  ;;  %3882 = vmatprep.subr.bf16.mxu1 %v5339_v55 }
 0x291   :  { %3842 = vmatpush1.bf16.msra.mxu0 %v5334_v56  ;;  %3883 = vmatpush1.bf16.msra.mxu1 %v5337_v57  ;;  %v5388_v56 = vld [vmem:[%s7474_s8 + $0x190] ss:$28 sps:$4 sm:$0xff]  }
 0x292   :  { %3843 = vmatprep.subr.bf16.mxu0 %v5342_v58  ;;  %3884 = vmatprep.subr.bf16.mxu1 %v5345_v59  ;;  %v5391_v57 = vld [vmem:[%s7474_s8 + $0x510] ss:$28 sps:$4 sm:$0xff]  }
 0x295   :  { %3844 = vmatpush2.bf16.msra.mxu0 %v5340_v60  ;;  %3885 = vmatpush2.bf16.msra.mxu1 %v5343_v61  ;;  %v5396_v60 = vld [vmem:[%s7474_s8 + $0x15c] ss:$28 sps:$4 sm:$0xff]  }
 0x296   :  { %3845 = vmatprep.subr.bf16.mxu0 %v5348_v62  ;;  %3886 = vmatprep.subr.bf16.mxu1 %v5351_v63  ;;  %v5399_v61 = vld [vmem:[%s7474_s8 + $0x4dc] ss:$28 sps:$4 sm:$0xff]  }
 0x297   :  { %v5394_v62 = vld [vmem:[%s7474_s8 + $0x158] ss:$28 sps:$4 sm:$0xff]  }
 0x298   :  { %v5397_v63 = vld [vmem:[%s7474_s8 + $0x4d8] ss:$28 sps:$4 sm:$0xff]  }
 0x299   :  { %3846 = vmatpush2.bf16.msra.mxu0 %v5346_v2  ;;  %3887 = vmatpush2.bf16.msra.mxu1 %v5349_v3  ;;  %v5402_v2 = vld [vmem:[%s7474_s8 + $0x124] ss:$28 sps:$4 sm:$0xff]  }
 0x29a   :  { %3847 = vmatprep.subr.bf16.mxu0 %v5354_v4  ;;  %3888 = vmatprep.subr.bf16.mxu1 %v5357_v5  ;;  %v5405_v3 = vld [vmem:[%s7474_s8 + $0x4a4] ss:$28 sps:$4 sm:$0xff]  }
 0x29b   :  { %v5400_v4 = vld [vmem:[%s7474_s8 + $0x120] ss:$28 sps:$4 sm:$0xff]  }
 0x29c   :  { %v5403_v5 = vld [vmem:[%s7474_s8 + $0x4a0] ss:$28 sps:$4 sm:$0xff]  }
 0x29d   :  { %3848 = vmatpush2.bf16.msra.mxu0 %v5352_v6  ;;  %3889 = vmatpush2.bf16.msra.mxu1 %v5355_v7  ;;  %v5408_v6 = vld [vmem:[%s7474_s8 + $0xec] ss:$28 sps:$4 sm:$0xff]  }
 0x29e   :  { %3849 = vmatprep.subr.bf16.mxu0 %v5360_v10  ;;  %3890 = vmatprep.subr.bf16.mxu1 %v5363_v11  ;;  %v5411_v7 = vld [vmem:[%s7474_s8 + $0x46c] ss:$28 sps:$4 sm:$0xff]  }
 0x29f   :  { %v5406_v10 = vld [vmem:[%s7474_s8 + $0xe8] ss:$28 sps:$4 sm:$0xff]  }
 0x2a0   :  { %v5409_v11 = vld [vmem:[%s7474_s8 + $0x468] ss:$28 sps:$4 sm:$0xff]  }
 0x2a1   :  { %3850 = vmatpush2.bf16.msra.mxu0 %v5358_v12  ;;  %3891 = vmatpush2.bf16.msra.mxu1 %v5361_v13  ;;  %v5414_v12 = vld [vmem:[%s7474_s8 + $0xb4] ss:$28 sps:$4 sm:$0xff]  }
 0x2a2   :  { %3851 = vmatprep.subr.bf16.mxu0 %v5366_v14  ;;  %3892 = vmatprep.subr.bf16.mxu1 %v5369_v15  ;;  %v5417_v13 = vld [vmem:[%s7474_s8 + $0x434] ss:$28 sps:$4 sm:$0xff]  }
 0x2a3   :  { %v5412_v14 = vld [vmem:[%s7474_s8 + $0xb0] ss:$28 sps:$4 sm:$0xff]  }
 0x2a4   :  { %v5415_v15 = vld [vmem:[%s7474_s8 + $0x430] ss:$28 sps:$4 sm:$0xff]  }
 0x2a5   :  { %3852 = vmatpush2.bf16.msra.mxu0 %v5364_v17  ;;  %3893 = vmatpush2.bf16.msra.mxu1 %v5367_v18  ;;  %v5420_v17 = vld [vmem:[%s7474_s8 + $0x7c] ss:$28 sps:$4 sm:$0xff]  }
 0x2a6   :  { %3853 = vmatprep.subr.bf16.mxu0 %v5372_v21  ;;  %3894 = vmatprep.subr.bf16.mxu1 %v5375_v22  ;;  %v5423_v18 = vld [vmem:[%s7474_s8 + $0x3fc] ss:$28 sps:$4 sm:$0xff]  }
 0x2a7   :  { %v5418_v21 = vld [vmem:[%s7474_s8 + $0x78] ss:$28 sps:$4 sm:$0xff]  }
 0x2a8   :  { %v5421_v22 = vld [vmem:[%s7474_s8 + $0x3f8] ss:$28 sps:$4 sm:$0xff]  }
 0x2a9   :  { %3854 = vmatpush2.bf16.msra.mxu0 %v5370_v23  ;;  %3895 = vmatpush2.bf16.msra.mxu1 %v5373_v24  ;;  %v5426_v23 = vld [vmem:[%s7474_s8 + $0x44] ss:$28 sps:$4 sm:$0xff]  }
 0x2aa   :  { %3855 = vmatprep.subr.bf16.mxu0 %v5378_v25  ;;  %3896 = vmatprep.subr.bf16.mxu1 %v5381_v26  ;;  %v5429_v24 = vld [vmem:[%s7474_s8 + $0x3c4] ss:$28 sps:$4 sm:$0xff]  }
 0x2ab   :  { %v5424_v25 = vld [vmem:[%s7474_s8 + $0x40] ss:$28 sps:$4 sm:$0xff]  }
 0x2ac   :  { %v5427_v26 = vld [vmem:[%s7474_s8 + $0x3c0] ss:$28 sps:$4 sm:$0xff]  }
 0x2ad   :  { %3856 = vmatpush2.bf16.msra.mxu0 %v5376_v27  ;;  %3897 = vmatpush2.bf16.msra.mxu1 %v5379_v28  ;;  %v5432_v27 = vld [vmem:[%s7474_s8 + $0xc] ss:$28 sps:$4 sm:$0xff]  }
 0x2ae   :  { %3857 = vmatprep.subr.bf16.mxu0 %v5384_v29  ;;  %3898 = vmatprep.subr.bf16.mxu1 %v5387_v30  ;;  %v5435_v28 = vld [vmem:[%s7474_s8 + $0x38c] ss:$28 sps:$4 sm:$0xff]  }
 0x2af   :  { %v5430_v29 = vld [vmem:[%s7474_s8 + $0x8] ss:$28 sps:$4 sm:$0xff]  }
 0x2b0   :  { %v5433_v30 = vld [vmem:[%s7474_s8 + $0x388] ss:$28 sps:$4 sm:$0xff]  }
 0x2b1   :  { %3858 = vmatpush2.bf16.msra.mxu0 %v5382_v9  ;;  %3899 = vmatpush2.bf16.msra.mxu1 %v5385_v31  ;;  %v5438_v9 = vld [vmem:[%s7474_s8 + $0x354] ss:$28 sps:$4 sm:$0xff]  }
 0x2b2   :  { %3909 = vmatprep.subr.bf16.mxu0 %v5390_v32  ;;  %3950 = vmatprep.subr.bf16.mxu1 %v5393_v52  ;;  %v5441_v31 = vld [vmem:[%s7474_s8 + $0x6d4] ss:$28 sps:$4 sm:$0xff]  }
 0x2b3   :  { %v5436_v32 = vld [vmem:[%s7474_s8 + $0x350] ss:$28 sps:$4 sm:$0xff]  }
 0x2b4   :  { %v5439_v52 = vld [vmem:[%s7474_s8 + $0x6d0] ss:$28 sps:$4 sm:$0xff]  }
 0x334   :  { %v2326_v8 = vpop.f32.mrf.mxu0  ;;  %v2367_v16 = vpop.f32.mrf.mxu1 }
 0x335   :  { %v2327_v37 = vadd.f32 %v2326_v8, %v2115_v20  ;;  %v2368_v39 = vadd.f32 %v2367_v16, %v2123_v33  ;;  %v5447_v20 = vld [vmem:[%s7474_s8 + $0x69c] ss:$28 sps:$4 sm:$0xff]   ;;  %v5453_v8 = vld [vmem:[%s7474_s8 + $0x664] ss:$28 sps:$4 sm:$0xff]  }
 0x336   :  { %v2328_v41 = vpop.f32.mrf.mxu0  ;;  %v2369_v42 = vpop.f32.mrf.mxu1  ;;  %v5442_v33 = vld [vmem:[%s7474_s8 + $0x318] ss:$28 sps:$4 sm:$0xff]   ;;  %v5448_v16 = vld [vmem:[%s7474_s8 + $0x2e0] ss:$28 sps:$4 sm:$0xff]  }
 0x337   :  { %v2329_v43 = vadd.f32 %v2328_v41, %v2119_v34  ;;  %v2370_v44 = vadd.f32 %v2369_v42, %v2127_v35  ;;  %v2374_v45 = vmax.f32 %v2327_v37, 0.0  ;;  %v2376_v46 = vmax.f32 %v2368_v39, 0.0  ;;  %v5445_v34 = vld [vmem:[%s7474_s8 + $0x698] ss:$28 sps:$4 sm:$0xff]   ;;  %v5450_v35 = vld [vmem:[%s7474_s8 + $0x2e4] ss:$28 sps:$4 sm:$0xff]  }
 0x338   :  { %v2330_v47 = vpop.f32.mrf.mxu0  ;;  %v2371_v48 = vpop.f32.mrf.mxu1  ;;  %v5451_v37 = vld [vmem:[%s7474_s8 + $0x660] ss:$28 sps:$4 sm:$0xff]   ;;  %v5456_v39 = vld [vmem:[%s7474_s8 + $0x2ac] ss:$28 sps:$4 sm:$0xff]  }
 0x339   :  { %v2375_v49 = vmax.f32 %v2329_v43, 0.0  ;;  %v2377_v50 = vmax.f32 %v2370_v44, 0.0  ;;  %v6950_v58 = vpack.c.bf16 %v2374_v45, %v2374_v45  ;;  %v6952_v59 = vpack.c.bf16 %v2376_v46, %v2376_v46  ;;  %v5459_v41 = vld [vmem:[%s7474_s8 + $0x62c] ss:$28 sps:$4 sm:$0xff]   ;;  %v5462_v44 = vld [vmem:[%s7474_s8 + $0x274] ss:$28 sps:$4 sm:$0xff]  }
 0x33a   :  { %v2331_v51 = vpop.f32.mrf.mxu0  ;;  %v2372_v53 = vpop.f32.mrf.mxu1  ;;  %v5454_v42 = vld [vmem:[%s7474_s8 + $0x2a8] ss:$28 sps:$4 sm:$0xff]   ;;  %v5465_v45 = vld [vmem:[%s7474_s8 + $0x5f4] ss:$28 sps:$4 sm:$0xff]   ;;  %v5468_v48 = vld [vmem:[%s7474_s8 + $0x23c] ss:$28 sps:$4 sm:$0xff]  }
 0x33b   :  { %v6940_v54 = vpack.c.bf16 %v2375_v49, %v2375_v49  ;;  %v6942_v55 = vpack.c.bf16 %v2377_v50, %v2377_v50  ;;  %v5457_v43 = vld [vmem:[%s7474_s8 + $0x628] ss:$28 sps:$4 sm:$0xff]   ;;  %v5460_v46 = vld [vmem:[%s7474_s8 + $0x270] ss:$28 sps:$4 sm:$0xff]   ;;  %v5471_v49 = vld [vmem:[%s7474_s8 + $0x5bc] ss:$28 sps:$4 sm:$0xff]  }
 0x33c   :  { %v5463_v47 = vld [vmem:[%s7474_s8 + $0x5f0] ss:$28 sps:$4 sm:$0xff]   ;;  %v5466_v50 = vld [vmem:[%s7474_s8 + $0x238] ss:$28 sps:$4 sm:$0xff]   ;;  %v5474_v53 = vld [vmem:[%s7474_s8 + $0x204] ss:$28 sps:$4 sm:$0xff]  }
 0x33d   :  { %3859 = vmatprep.mubr.bf16.mxu0 %v6940_v54  ;;  %3900 = vmatprep.mubr.bf16.mxu1 %v6942_v55  ;;  %v5469_v51 = vld [vmem:[%s7474_s8 + $0x5b8] ss:$28 sps:$4 sm:$0xff]  }
 0x33e   :  { %3860 = vmatmul.mubr.bf16.vlgmr.msra.gmra.mxu0 %v6950_v58  ;;  %3901 = vmatmul.mubr.bf16.vlgmr.msra.gmra.mxu1 %v6952_v59 }
 0x33f   :  { %3910 = vmatpush1.bf16.msra.mxu0 %v5388_v56  ;;  %3951 = vmatpush1.bf16.msra.mxu1 %v5391_v57  ;;  %v5477_v56 = vld [vmem:[%s7474_s8 + $0x584] ss:$28 sps:$4 sm:$0xff]  }
 0x340   :  { %3941 = vmatprep.mubr.bf16.mxu0 %v6940_v54  ;;  %3982 = vmatprep.mubr.bf16.mxu1 %v6942_v55  ;;  %v5472_v57 = vld [vmem:[%s7474_s8 + $0x200] ss:$28 sps:$4 sm:$0xff]  }
 0x341   :  { %3911 = vmatprep.subr.bf16.mxu0 %v5396_v60  ;;  %3952 = vmatprep.subr.bf16.mxu1 %v5399_v61  ;;  %v5475_v60 = vld [vmem:[%s7474_s8 + $0x580] ss:$28 sps:$4 sm:$0xff]   ;;  %v5480_v61 = vld [vmem:[%s7474_s8 + $0x1cc] ss:$28 sps:$4 sm:$0xff]  }
 0x343   :  { %3912 = vmatpush1.bf16.msra.mxu0 %v5394_v62  ;;  %3953 = vmatpush1.bf16.msra.mxu1 %v5397_v63  ;;  %v5483_v62 = vld [vmem:[%s7474_s8 + $0x54c] ss:$28 sps:$4 sm:$0xff]  }
 0x344   :  { %3913 = vmatprep.subr.bf16.mxu0 %v5402_v2  ;;  %3954 = vmatprep.subr.bf16.mxu1 %v5405_v3  ;;  %v5478_v63 = vld [vmem:[%s7474_s8 + $0x1c8] ss:$28 sps:$4 sm:$0xff]   ;;  %v5486_v3 = vld [vmem:[%s7474_s8 + $0x19c] ss:$28 sps:$4 sm:$0xff]  }
 0x345   :  { %v5481_v2 = vld [vmem:[%s7474_s8 + $0x548] ss:$28 sps:$4 sm:$0xff]  }
 0x347   :  { %3914 = vmatpush1.bf16.msra.mxu0 %v5400_v4  ;;  %3955 = vmatpush1.bf16.msra.mxu1 %v5403_v5  ;;  %v5489_v4 = vld [vmem:[%s7474_s8 + $0x51c] ss:$28 sps:$4 sm:$0xff]  }
 0x348   :  { %3915 = vmatprep.subr.bf16.mxu0 %v5408_v6  ;;  %3956 = vmatprep.subr.bf16.mxu1 %v5411_v7  ;;  %v5484_v5 = vld [vmem:[%s7474_s8 + $0x198] ss:$28 sps:$4 sm:$0xff]   ;;  %v5492_v7 = vld [vmem:[%s7474_s8 + $0x164] ss:$28 sps:$4 sm:$0xff]  }
 0x349   :  { %v5487_v6 = vld [vmem:[%s7474_s8 + $0x518] ss:$28 sps:$4 sm:$0xff]  }
 0x34b   :  { %3916 = vmatpush1.bf16.msra.mxu0 %v5406_v10  ;;  %3957 = vmatpush1.bf16.msra.mxu1 %v5409_v11  ;;  %v5495_v10 = vld [vmem:[%s7474_s8 + $0x4e4] ss:$28 sps:$4 sm:$0xff]  }
 0x34c   :  { %3917 = vmatprep.subr.bf16.mxu0 %v5414_v12  ;;  %3958 = vmatprep.subr.bf16.mxu1 %v5417_v13  ;;  %v5490_v11 = vld [vmem:[%s7474_s8 + $0x160] ss:$28 sps:$4 sm:$0xff]   ;;  %v5498_v13 = vld [vmem:[%s7474_s8 + $0x12c] ss:$28 sps:$4 sm:$0xff]  }
 0x34d   :  { %v5493_v12 = vld [vmem:[%s7474_s8 + $0x4e0] ss:$28 sps:$4 sm:$0xff]  }
 0x34f   :  { %3918 = vmatpush1.bf16.msra.mxu0 %v5412_v14  ;;  %3959 = vmatpush1.bf16.msra.mxu1 %v5415_v15  ;;  %v5501_v14 = vld [vmem:[%s7474_s8 + $0x4ac] ss:$28 sps:$4 sm:$0xff]  }
 0x350   :  { %3919 = vmatprep.subr.bf16.mxu0 %v5420_v17  ;;  %3960 = vmatprep.subr.bf16.mxu1 %v5423_v18  ;;  %v5496_v15 = vld [vmem:[%s7474_s8 + $0x128] ss:$28 sps:$4 sm:$0xff]   ;;  %v5504_v18 = vld [vmem:[%s7474_s8 + $0xf4] ss:$28 sps:$4 sm:$0xff]  }
 0x351   :  { %v5499_v17 = vld [vmem:[%s7474_s8 + $0x4a8] ss:$28 sps:$4 sm:$0xff]  }
 0x353   :  { %3920 = vmatpush1.bf16.msra.mxu0 %v5418_v21  ;;  %3961 = vmatpush1.bf16.msra.mxu1 %v5421_v22  ;;  %v5507_v21 = vld [vmem:[%s7474_s8 + $0x474] ss:$28 sps:$4 sm:$0xff]  }
 0x354   :  { %3921 = vmatprep.subr.bf16.mxu0 %v5426_v23  ;;  %3962 = vmatprep.subr.bf16.mxu1 %v5429_v24  ;;  %v5502_v22 = vld [vmem:[%s7474_s8 + $0xf0] ss:$28 sps:$4 sm:$0xff]   ;;  %v5510_v24 = vld [vmem:[%s7474_s8 + $0xbc] ss:$28 sps:$4 sm:$0xff]  }
 0x355   :  { %v5505_v23 = vld [vmem:[%s7474_s8 + $0x470] ss:$28 sps:$4 sm:$0xff]  }
 0x357   :  { %3922 = vmatpush1.bf16.msra.mxu0 %v5424_v25  ;;  %3963 = vmatpush1.bf16.msra.mxu1 %v5427_v26  ;;  %v5513_v25 = vld [vmem:[%s7474_s8 + $0x43c] ss:$28 sps:$4 sm:$0xff]  }
 0x358   :  { %3923 = vmatprep.subr.bf16.mxu0 %v5432_v27  ;;  %3964 = vmatprep.subr.bf16.mxu1 %v5435_v28  ;;  %v5508_v26 = vld [vmem:[%s7474_s8 + $0xb8] ss:$28 sps:$4 sm:$0xff]   ;;  %v5516_v28 = vld [vmem:[%s7474_s8 + $0x84] ss:$28 sps:$4 sm:$0xff]  }
 0x359   :  { %v5511_v27 = vld [vmem:[%s7474_s8 + $0x438] ss:$28 sps:$4 sm:$0xff]  }
 0x35b   :  { %3924 = vmatpush1.bf16.msra.mxu0 %v5430_v29  ;;  %3965 = vmatpush1.bf16.msra.mxu1 %v5433_v30  ;;  %v5519_v29 = vld [vmem:[%s7474_s8 + $0x404] ss:$28 sps:$4 sm:$0xff]  }
 0x35c   :  { %3925 = vmatprep.subr.bf16.mxu0 %v5438_v9  ;;  %3966 = vmatprep.subr.bf16.mxu1 %v5441_v31  ;;  %v5514_v30 = vld [vmem:[%s7474_s8 + $0x80] ss:$28 sps:$4 sm:$0xff]   ;;  %v5522_v31 = vld [vmem:[%s7474_s8 + $0x4c] ss:$28 sps:$4 sm:$0xff]  }
 0x35d   :  { %v5517_v9 = vld [vmem:[%s7474_s8 + $0x400] ss:$28 sps:$4 sm:$0xff]  }
 0x35f   :  { %3926 = vmatpush2.bf16.msra.mxu0 %v5436_v32  ;;  %3967 = vmatpush2.bf16.msra.mxu1 %v5439_v52  ;;  %v5525_v32 = vld [vmem:[%s7474_s8 + $0x3cc] ss:$28 sps:$4 sm:$0xff]  }
 0x360   :  { %3927 = vmatprep.subr.bf16.mxu0 %v5444_v19  ;;  %3968 = vmatprep.subr.bf16.mxu1 %v5447_v20  ;;  %v5520_v52 = vld [vmem:[%s7474_s8 + $0x48] ss:$28 sps:$4 sm:$0xff]   ;;  %v5528_v20 = vld [vmem:[%s7474_s8 + $0x14] ss:$28 sps:$4 sm:$0xff]  }
 0x361   :  { %v5523_v19 = vld [vmem:[%s7474_s8 + $0x3c8] ss:$28 sps:$4 sm:$0xff]  }
 0x363   :  { %3928 = vmatpush2.bf16.msra.mxu0 %v5442_v33  ;;  %3969 = vmatpush2.bf16.msra.mxu1 %v5445_v34  ;;  %v5531_v33 = vld [vmem:[%s7474_s8 + $0x394] ss:$28 sps:$4 sm:$0xff]  }
 0x364   :  { %3929 = vmatprep.subr.bf16.mxu0 %v5450_v35  ;;  %3970 = vmatprep.subr.bf16.mxu1 %v5453_v8  ;;  %v5526_v34 = vld [vmem:[%s7474_s8 + $0x10] ss:$28 sps:$4 sm:$0xff]   ;;  %v5534_v8 = vld [vmem:[%s7474_s8 + $0x35c] ss:$28 sps:$4 sm:$0xff]  }
 0x365   :  { %v5529_v35 = vld [vmem:[%s7474_s8 + $0x390] ss:$28 sps:$4 sm:$0xff]  }
 0x367   :  { %3930 = vmatpush2.bf16.msra.mxu0 %v5448_v16  ;;  %3971 = vmatpush2.bf16.msra.mxu1 %v5451_v37  ;;  %v5537_v16 = vld [vmem:[%s7474_s8 + $0x6dc] ss:$28 sps:$4 sm:$0xff]  }
 0x368   :  { %3931 = vmatprep.subr.bf16.mxu0 %v5456_v39  ;;  %3972 = vmatprep.subr.bf16.mxu1 %v5459_v41  ;;  %v5532_v37 = vld [vmem:[%s7474_s8 + $0x358] ss:$28 sps:$4 sm:$0xff]   ;;  %v5540_v41 = vld [vmem:[%s7474_s8 + $0x324] ss:$28 sps:$4 sm:$0xff]  }
 0x369   :  { %v5535_v39 = vld [vmem:[%s7474_s8 + $0x6d8] ss:$28 sps:$4 sm:$0xff]  }
 0x36b   :  { %3932 = vmatpush2.bf16.msra.mxu0 %v5454_v42  ;;  %3973 = vmatpush2.bf16.msra.mxu1 %v5457_v43  ;;  %v5543_v42 = vld [vmem:[%s7474_s8 + $0x6a4] ss:$28 sps:$4 sm:$0xff]  }
 0x36c   :  { %3933 = vmatprep.subr.bf16.mxu0 %v5462_v44  ;;  %3974 = vmatprep.subr.bf16.mxu1 %v5465_v45  ;;  %v5538_v43 = vld [vmem:[%s7474_s8 + $0x320] ss:$28 sps:$4 sm:$0xff]   ;;  %v5546_v45 = vld [vmem:[%s7474_s8 + $0x2ec] ss:$28 sps:$4 sm:$0xff]  }
 0x36d   :  { %v5541_v44 = vld [vmem:[%s7474_s8 + $0x6a0] ss:$28 sps:$4 sm:$0xff]  }
 0x36f   :  { %3934 = vmatpush2.bf16.msra.mxu0 %v5460_v46  ;;  %3975 = vmatpush2.bf16.msra.mxu1 %v5463_v47  ;;  %v5549_v46 = vld [vmem:[%s7474_s8 + $0x66c] ss:$28 sps:$4 sm:$0xff]  }
 0x370   :  { %3935 = vmatprep.subr.bf16.mxu0 %v5468_v48  ;;  %3976 = vmatprep.subr.bf16.mxu1 %v5471_v49  ;;  %v5544_v47 = vld [vmem:[%s7474_s8 + $0x2e8] ss:$28 sps:$4 sm:$0xff]   ;;  %v5552_v49 = vld [vmem:[%s7474_s8 + $0x2b4] ss:$28 sps:$4 sm:$0xff]  }
 0x371   :  { %v5547_v48 = vld [vmem:[%s7474_s8 + $0x668] ss:$28 sps:$4 sm:$0xff]  }
 0x373   :  { %3936 = vmatpush2.bf16.msra.mxu0 %v5466_v50  ;;  %3977 = vmatpush2.bf16.msra.mxu1 %v5469_v51  ;;  %v5555_v50 = vld [vmem:[%s7474_s8 + $0x634] ss:$28 sps:$4 sm:$0xff]  }
 0x374   :  { %3937 = vmatprep.subr.bf16.mxu0 %v5474_v53  ;;  %3978 = vmatprep.subr.bf16.mxu1 %v5477_v56  ;;  %v5550_v51 = vld [vmem:[%s7474_s8 + $0x2b0] ss:$28 sps:$4 sm:$0xff]   ;;  %v5558_v56 = vld [vmem:[%s7474_s8 + $0x27c] ss:$28 sps:$4 sm:$0xff]  }
 0x375   :  { %v5553_v53 = vld [vmem:[%s7474_s8 + $0x630] ss:$28 sps:$4 sm:$0xff]  }
 0x377   :  { %3938 = vmatpush2.bf16.msra.mxu0 %v5472_v57  ;;  %3979 = vmatpush2.bf16.msra.mxu1 %v5475_v60  ;;  %v5561_v57 = vld [vmem:[%s7474_s8 + $0x5fc] ss:$28 sps:$4 sm:$0xff]  }
 0x378   :  { %3939 = vmatprep.subr.bf16.mxu0 %v5480_v61  ;;  %3980 = vmatprep.subr.bf16.mxu1 %v5483_v62  ;;  %v5556_v60 = vld [vmem:[%s7474_s8 + $0x278] ss:$28 sps:$4 sm:$0xff]   ;;  %v5564_v62 = vld [vmem:[%s7474_s8 + $0x244] ss:$28 sps:$4 sm:$0xff]  }
 0x379   :  { %v5559_v61 = vld [vmem:[%s7474_s8 + $0x5f8] ss:$28 sps:$4 sm:$0xff]  }
 0x37b   :  { %3940 = vmatpush2.bf16.msra.mxu0 %v5478_v63  ;;  %3981 = vmatpush2.bf16.msra.mxu1 %v5481_v2  ;;  %v5567_v63 = vld [vmem:[%s7474_s8 + $0x5c4] ss:$28 sps:$4 sm:$0xff]  }
 0x37c   :  { %3991 = vmatprep.subr.bf16.mxu0 %v5486_v3  ;;  %4032 = vmatprep.subr.bf16.mxu1 %v5489_v4  ;;  %v5562_v2 = vld [vmem:[%s7474_s8 + $0x240] ss:$28 sps:$4 sm:$0xff]   ;;  %v5570_v4 = vld [vmem:[%s7474_s8 + $0x20c] ss:$28 sps:$4 sm:$0xff]  }
 0x37d   :  { %v5565_v3 = vld [vmem:[%s7474_s8 + $0x5c0] ss:$28 sps:$4 sm:$0xff]  }
 0x37e   :  { %3942 = vmatmul.mubr.bf16.vlgmr.msra.gmra.mxu0 %v6950_v58  ;;  %3983 = vmatmul.mubr.bf16.vlgmr.msra.gmra.mxu1 %v6952_v59 }
 0x37f   :  { %3992 = vmatpush1.bf16.msra.mxu0 %v5484_v5  ;;  %4023 = vmatprep.mubr.bf16.mxu0 %v6940_v54  ;;  %v5573_v5 = vld [vmem:[%s7474_s8 + $0x58c] ss:$28 sps:$4 sm:$0xff]  }
 0x380   :  { %4033 = vmatpush1.bf16.msra.mxu1 %v5487_v6  ;;  %4064 = vmatprep.mubr.bf16.mxu1 %v6942_v55  ;;  %v5568_v6 = vld [vmem:[%s7474_s8 + $0x208] ss:$28 sps:$4 sm:$0xff]  }
 0x381   :  { %3993 = vmatprep.subr.bf16.mxu0 %v5492_v7  ;;  %4034 = vmatprep.subr.bf16.mxu1 %v5495_v10  ;;  %v5571_v7 = vld [vmem:[%s7474_s8 + $0x588] ss:$28 sps:$4 sm:$0xff]   ;;  %v5576_v10 = vld [vmem:[%s7474_s8 + $0x1d4] ss:$28 sps:$4 sm:$0xff]  }
 0x383   :  { %3994 = vmatpush1.bf16.msra.mxu0 %v5490_v11  ;;  %v5579_v11 = vld [vmem:[%s7474_s8 + $0x554] ss:$28 sps:$4 sm:$0xff]  }
 0x384   :  { %4035 = vmatpush1.bf16.msra.mxu1 %v5493_v12  ;;  %3995 = vmatprep.subr.bf16.mxu0 %v5498_v13  ;;  %v5574_v12 = vld [vmem:[%s7474_s8 + $0x1d0] ss:$28 sps:$4 sm:$0xff]  }
 0x385   :  { %4036 = vmatprep.subr.bf16.mxu1 %v5501_v14  ;;  %v5577_v13 = vld [vmem:[%s7474_s8 + $0x550] ss:$28 sps:$4 sm:$0xff]   ;;  %v5580_v14 = vld [vmem:[%s7474_s8 + $0x360] ss:$28 sps:$4 sm:$0xff]  }
 0x387   :  { %3996 = vmatpush1.bf16.msra.mxu0 %v5496_v15  ;;  %v5581_v15 = vld [vmem:[%s7474_s8 + $0x6e0] ss:$28 sps:$4 sm:$0xff]  }
 0x388   :  { %4037 = vmatpush1.bf16.msra.mxu1 %v5499_v17  ;;  %3997 = vmatprep.subr.bf16.mxu0 %v5504_v18  ;;  %v5582_v17 = vld [vmem:[%s7474_s8 + $0x1a0] ss:$28 sps:$4 sm:$0xff]  }
 0x389   :  { %4038 = vmatprep.subr.bf16.mxu1 %v5507_v21  ;;  %v5583_v18 = vld [vmem:[%s7474_s8 + $0x520] ss:$28 sps:$4 sm:$0xff]   ;;  %v5584_v21 = vld [vmem:[%s7474_s8 + $0x328] ss:$28 sps:$4 sm:$0xff]  }
 0x38b   :  { %3998 = vmatpush1.bf16.msra.mxu0 %v5502_v22  ;;  %v5585_v22 = vld [vmem:[%s7474_s8 + $0x6a8] ss:$28 sps:$4 sm:$0xff]  }
 0x38c   :  { %4039 = vmatpush1.bf16.msra.mxu1 %v5505_v23  ;;  %3999 = vmatprep.subr.bf16.mxu0 %v5510_v24  ;;  %v5586_v23 = vld [vmem:[%s7474_s8 + $0x168] ss:$28 sps:$4 sm:$0xff]  }
 0x38d   :  { %4040 = vmatprep.subr.bf16.mxu1 %v5513_v25  ;;  %v5587_v24 = vld [vmem:[%s7474_s8 + $0x4e8] ss:$28 sps:$4 sm:$0xff]   ;;  %v5588_v25 = vld [vmem:[%s7474_s8 + $0x2f0] ss:$28 sps:$4 sm:$0xff]  }
 0x38f   :  { %4000 = vmatpush1.bf16.msra.mxu0 %v5508_v26  ;;  %v5589_v26 = vld [vmem:[%s7474_s8 + $0x670] ss:$28 sps:$4 sm:$0xff]  }
 0x390   :  { %4041 = vmatpush1.bf16.msra.mxu1 %v5511_v27  ;;  %4001 = vmatprep.subr.bf16.mxu0 %v5516_v28  ;;  %v5591_v27 = vld [vmem:[%s7474_s8 + $0x4b0] ss:$28 sps:$4 sm:$0xff]   ;;  %v5593_v28 = vld [vmem:[%s7474_s8 + $0x638] ss:$28 sps:$4 sm:$0xff]  }
 0x391   :  { %4042 = vmatprep.subr.bf16.mxu1 %v5519_v29  ;;  %v5594_v29 = vld [vmem:[%s7474_s8 + $0xf8] ss:$28 sps:$4 sm:$0xff]  }
 0x393   :  { %4002 = vmatpush1.bf16.msra.mxu0 %v5514_v30  ;;  %v5595_v30 = vld [vmem:[%s7474_s8 + $0x478] ss:$28 sps:$4 sm:$0xff]  }
 0x394   :  { %4043 = vmatpush1.bf16.msra.mxu1 %v5517_v9  ;;  %4003 = vmatprep.subr.bf16.mxu0 %v5522_v31  ;;  %v5596_v9 = vld [vmem:[%s7474_s8 + $0x280] ss:$28 sps:$4 sm:$0xff]  }
 0x395   :  { %4044 = vmatprep.subr.bf16.mxu1 %v5525_v32  ;;  %v5597_v31 = vld [vmem:[%s7474_s8 + $0x600] ss:$28 sps:$4 sm:$0xff]  }
 0x396   :  { %v5598_v32 = vld [vmem:[%s7474_s8 + $0xc0] ss:$28 sps:$4 sm:$0xff]  }
 0x397   :  { %4004 = vmatpush1.bf16.msra.mxu0 %v5520_v52  ;;  %v5599_v52 = vld [vmem:[%s7474_s8 + $0x440] ss:$28 sps:$4 sm:$0xff]  }
 0x398   :  { %4045 = vmatpush1.bf16.msra.mxu1 %v5523_v19  ;;  %4005 = vmatprep.subr.bf16.mxu0 %v5528_v20  ;;  %v5600_v19 = vld [vmem:[%s7474_s8 + $0x248] ss:$28 sps:$4 sm:$0xff]  }
 0x399   :  { %4046 = vmatprep.subr.bf16.mxu1 %v5531_v33  ;;  %v5601_v20 = vld [vmem:[%s7474_s8 + $0x5c8] ss:$28 sps:$4 sm:$0xff]  }
 0x39a   :  { %v5602_v33 = vld [vmem:[%s7474_s8 + $0x88] ss:$28 sps:$4 sm:$0xff]  }
 0x39b   :  { %4006 = vmatpush1.bf16.msra.mxu0 %v5526_v34  ;;  %v5603_v34 = vld [vmem:[%s7474_s8 + $0x408] ss:$28 sps:$4 sm:$0xff]  }
 0x39c   :  { %4047 = vmatpush1.bf16.msra.mxu1 %v5529_v35  ;;  %4007 = vmatprep.subr.bf16.mxu0 %v5534_v8  ;;  %v5604_v35 = vld [vmem:[%s7474_s8 + $0x210] ss:$28 sps:$4 sm:$0xff]  }
 0x39d   :  { %4048 = vmatprep.subr.bf16.mxu1 %v5537_v16  ;;  %v5605_v8 = vld [vmem:[%s7474_s8 + $0x590] ss:$28 sps:$4 sm:$0xff]  }
 0x39e   :  { %v5606_v16 = vld [vmem:[%s7474_s8 + $0x50] ss:$28 sps:$4 sm:$0xff]  }
 0x39f   :  { %4008 = vmatpush2.bf16.msra.mxu0 %v5532_v37  ;;  %v5607_v37 = vld [vmem:[%s7474_s8 + $0x3d0] ss:$28 sps:$4 sm:$0xff]  }
 0x3a0   :  { %4049 = vmatpush2.bf16.msra.mxu1 %v5535_v39  ;;  %4009 = vmatprep.subr.bf16.mxu0 %v5540_v41  ;;  %v5608_v39 = vld [vmem:[%s7474_s8 + $0x1d8] ss:$28 sps:$4 sm:$0xff]  }
 0x3a1   :  { %4050 = vmatprep.subr.bf16.mxu1 %v5543_v42  ;;  %v5609_v41 = vld [vmem:[%s7474_s8 + $0x558] ss:$28 sps:$4 sm:$0xff]  }
 0x3a2   :  { %v5610_v42 = vld [vmem:[%s7474_s8 + $0x18] ss:$28 sps:$4 sm:$0xff]  }
 0x3a3   :  { %4010 = vmatpush2.bf16.msra.mxu0 %v5538_v43  ;;  %v5611_v43 = vld [vmem:[%s7474_s8 + $0x398] ss:$28 sps:$4 sm:$0xff]  }
 0x3a4   :  { %4051 = vmatpush2.bf16.msra.mxu1 %v5541_v44  ;;  %4011 = vmatprep.subr.bf16.mxu0 %v5546_v45  ;;  %v7441_v44 = vld [vmem:[%s7475_s9] sm:$0x7f] }
 0x3a5   :  { %4052 = vmatprep.subr.bf16.mxu1 %v5549_v46  ;;  %v2643_v45 = vrot.slane %v7441_v44, %v6611_v36  ;;  %v2647_v46 = vrot.slane %v7441_v44, %v6617_v40 }
 0x3a7   :  { %4012 = vmatpush2.bf16.msra.mxu0 %v5544_v47 }
 0x3a8   :  { %4053 = vmatpush2.bf16.msra.mxu1 %v5547_v48  ;;  %4013 = vmatprep.subr.bf16.mxu0 %v5552_v49 }
 0x3a9   :  { %4054 = vmatprep.subr.bf16.mxu1 %v5555_v50 }
 0x3ab   :  { %4014 = vmatpush2.bf16.msra.mxu0 %v5550_v51 }
 0x3ac   :  { %4055 = vmatpush2.bf16.msra.mxu1 %v5553_v53  ;;  %4015 = vmatprep.subr.bf16.mxu0 %v5558_v56 }
 0x3ad   :  { %4056 = vmatprep.subr.bf16.mxu1 %v5561_v57 }
 0x3af   :  { %4016 = vmatpush2.bf16.msra.mxu0 %v5556_v60 }
 0x3b0   :  { %4057 = vmatpush2.bf16.msra.mxu1 %v5559_v61  ;;  %4017 = vmatprep.subr.bf16.mxu0 %v5564_v62 }
 0x3b1   :  { %4058 = vmatprep.subr.bf16.mxu1 %v5567_v63 }
 0x3b3   :  { %4018 = vmatpush2.bf16.msra.mxu0 %v5562_v2 }
 0x3b4   :  { %4059 = vmatpush2.bf16.msra.mxu1 %v5565_v3  ;;  %4019 = vmatprep.subr.bf16.mxu0 %v5570_v4 }
 0x3b5   :  { %4060 = vmatprep.subr.bf16.mxu1 %v5573_v5 }
 0x3b7   :  { %4020 = vmatpush2.bf16.msra.mxu0 %v5568_v6 }
 0x3b8   :  { %4061 = vmatpush2.bf16.msra.mxu1 %v5571_v7  ;;  %4021 = vmatprep.subr.bf16.mxu0 %v5576_v10 }
 0x3b9   :  { %4062 = vmatprep.subr.bf16.mxu1 %v5579_v11 }
 0x3bb   :  { %4022 = vmatpush2.bf16.msra.mxu0 %v5574_v12 }
 0x3bc   :  { %4063 = vmatpush2.bf16.msra.mxu1 %v5577_v13  ;;  %4806 = vmatprep.subr.bf16.mxu0 %v5580_v14 }
 0x3bd   :  { %4828 = vmatprep.subr.bf16.mxu1 %v5581_v15  ;;  %v2651_v15 = vrot.slane %v7441_v44, %v6623_v0 }
 0x3be   :  { %4024 = vmatmul.mubr.bf16.vlgmr.msra.gmra.mxu0 %v6950_v58 }
 0x3bf   :  { %4065 = vmatmul.mubr.bf16.vlgmr.msra.gmra.mxu1 %v6952_v59  ;;  %4807 = vmatpush3.bf16.msra.mxu0 %v5582_v17  ;;  %v2655_v17 = vrot.slane %v7441_v44, %v6626_v1 }
 0x3c0   :  { %4105 = vmatprep.mubr.bf16.mxu0 %v6940_v54  ;;  %4829 = vmatpush3.bf16.msra.mxu1 %v5583_v18  ;;  %v5590_v54 = vld [vmem:[%s7474_s8 + $0x130] ss:$28 sps:$4 sm:$0xff]  }
 0x3c1   :  { %4145 = vmatprep.mubr.bf16.mxu1 %v6942_v55  ;;  %4808 = vmatprep.subr.bf16.mxu0 %v5584_v21  ;;  %v5592_v55 = vld [vmem:[%s7474_s8 + $0x2b8] ss:$28 sps:$4 sm:$0xff]   ;;  %s5707_s8 = smov [#allocation4]  }
 0x3c2   :  { %4830 = vmatprep.subr.bf16.mxu1 %v5585_v22  ;;  %s4255_s9 = sshll.u32 %s5707_s8, 4  ;;  %s4256_s9 = int_to_ptr.vmem [resolvable:$true] %s4255_s9 }
 0x3c3   :  { %4809 = vmatpush3.bf16.msra.mxu0 %v5586_v23  ;;  %s5642_s25 = scalar_lea.vmem %s4256_s9, 128  ;;  %p5647_p1 = scmp.lt.s32.totalorder %s4256_s9, %s4256_s9 }
 0x3c4   :  { %4831 = vmatpush3.bf16.msra.mxu1 %v5587_v24  ;;  %4810 = vmatprep.subr.bf16.mxu0 %v5588_v25  ;;  %p5643_p0 = scmp.ne.s32.totalorder %s4256_s9, %s5642_s25  ;;  %p5648_p2 = scmp.lt.s32.totalorder %s5642_s25, %s5642_s25 }
 0x3c5   :  { %4832 = vmatprep.subr.bf16.mxu1 %v5589_v26 }
 0x3c6   :  { %p5649_p3 = por %p5648_p2, %p5647_p1 }
 0x3c7   :  { %4811 = vmatpush3.bf16.msra.mxu0 %v5590_v54 }
 0x3c8   :  { %4833 = vmatpush3.bf16.msra.mxu1 %v5591_v27  ;;  %4812 = vmatprep.subr.bf16.mxu0 %v5592_v55  ;;  %p5650_p4 = pnand %p5649_p3, %p5643_p0 }
 0x3c9   :  { %4834 = vmatprep.subr.bf16.mxu1 %v5593_v28 }
 0x3cb   :  { %4813 = vmatpush3.bf16.msra.mxu0 %v5594_v29 }
 0x3cc   :  { %4835 = vmatpush3.bf16.msra.mxu1 %v5595_v30  ;;  %4814 = vmatprep.subr.bf16.mxu0 %v5596_v9 }
 0x3cd   :  { %4836 = vmatprep.subr.bf16.mxu1 %v5597_v31 }
 0x3cf   :  { %4815 = vmatpush3.bf16.msra.mxu0 %v5598_v32 }
 0x3d0   :  { %4837 = vmatpush3.bf16.msra.mxu1 %v5599_v52  ;;  %4816 = vmatprep.subr.bf16.mxu0 %v5600_v19 }
 0x3d1   :  { %4838 = vmatprep.subr.bf16.mxu1 %v5601_v20 }
 0x3d3   :  { %4817 = vmatpush3.bf16.msra.mxu0 %v5602_v33 }
 0x3d4   :  { %4839 = vmatpush3.bf16.msra.mxu1 %v5603_v34  ;;  %4818 = vmatprep.subr.bf16.mxu0 %v5604_v35 }
 0x3d5   :  { %4840 = vmatprep.subr.bf16.mxu1 %v5605_v8 }
 0x3d7   :  { %4819 = vmatpush3.bf16.msra.mxu0 %v5606_v16 }
 0x3d8   :  { %4841 = vmatpush3.bf16.msra.mxu1 %v5607_v37  ;;  %4820 = vmatprep.subr.bf16.mxu0 %v5608_v39 }
 0x3d9   :  { %4842 = vmatprep.subr.bf16.mxu1 %v5609_v41 }
 0x3db   :  { %4821 = vmatpush3.bf16.msra.mxu0 %v5610_v42 }
 0x3dc   :  { %4843 = vmatpush3.bf16.msra.mxu1 %v5611_v43 }
 0x3de   :  { %4106 = vmatmul.mubr.bf16.vlgmr.msra.gmra.mxu0 %v6950_v58 }
 0x3df   :  { %4146 = vmatmul.mubr.bf16.vlgmr.msra.gmra.mxu1 %v6952_v59 }
 0x3fe   :  { %v3861_v47 = vpop.f32.mrf.mxu0  ;;  %v3902_v48 = vpop.f32.mrf.mxu1 }
 0x3ff   :  { %v3862_v49 = vadd.f32 %v3861_v47, %v2643_v45 }
 0x400   :  { %v3863_v50 = vpop.f32.mrf.mxu0  ;;  %v3904_v51 = vpop.f32.mrf.mxu1 }
 0x401   :  { %v3903_v53 = vadd.f32 %v3902_v48, %v3862_v49  ;;  %v3864_v58 = vadd.f32 %v3863_v50, %v2647_v46 }
 0x402   :  { %v3865_v56 = vpop.f32.mrf.mxu0  ;;  %v3906_v59 = vpop.f32.mrf.mxu1 }
 0x403   :  { %v4153_v57 = vsub.f32 0.0, %v3903_v53  ;;  %v3905_v60 = vadd.f32 %v3904_v51, %v3864_v58 }
 0x404   :  { %v3866_v61 = vpop.f32.mrf.mxu0  ;;  %v3907_v62 = vpop.f32.mrf.mxu1 }
 0x405   :  { %v4160_v63 = vmul.f32 1.442695, %v4153_v57  ;;  %v4154_v2 = vsub.f32 0.0, %v3905_v60 }
 0x407   :  { %5614 = vpow2.f32 %v4160_v63  ;;  %v4162_v36 = vmul.f32 1.442695, %v4154_v2 }
 0x409   :  { %5616 = vpow2.f32 %v4162_v36 }
 0x414   :  { %v5615_v3 = vpop.eup %5614 }
 0x415   :  { %v4174_v40 = vadd.f32 1.0, %v5615_v3 }
 0x416   :  { %v5617_v4 = vpop.eup %5616 }
 0x417   :  { %5618 = vrcp.f32 %v4174_v40  ;;  %v4175_v5 = vadd.f32 1.0, %v5617_v4 }
 0x419   :  { %5620 = vrcp.f32 %v4175_v5 }
 0x424   :  { %v5619_v6 = vpop.eup %5618 }
 0x425   :  { %v4188_v7 = vmax.f32 %v5619_v6, 0.0 }
 0x426   :  { %v5621_v10 = vpop.eup %5620 }
 0x427   :  { %v4189_v11 = vmax.f32 %v5621_v10, 0.0  ;;  %v4195_v12 = vmin.f32 %v4188_v7, 1.0 }
 0x429   :  { %v4196_v13 = vmin.f32 %v4189_v11, 1.0 }
 0x42b   :  { %v4802_v14 = vpack.c.bf16 %v4196_v13, %v4195_v12 }
 0x42d   :  { %4231 = vst [vmem:[#allocation2] sm:$0xff] %v4802_v14 }
 0x43e   :  { %v3943_v18 = vpop.f32.mrf.mxu0  ;;  %v3984_v21 = vpop.f32.mrf.mxu1 }
 0x43f   :  { %5653 = shalt.err (!%p5650_p4)
}
 0x440   :  { %4258 = dma.vmem_to_hbm [thread:$0]  %s4256_s9, 128, %s7477_s11, [#allocation5]   ;;  %v3944_v0 = vadd.f32 %v3943_v18, %v2651_v15  ;;  %v3945_v22 = vpop.f32.mrf.mxu0  ;;  %v3986_v23 = vpop.f32.mrf.mxu1 }
 0x441   :  { %v3946_v25 = vadd.f32 %v3945_v22, %v2655_v17  ;;  %s5708_s27 = smov [#allocation6]  }
 0x442   :  { %v3985_v24 = vadd.f32 %v3984_v21, %v3944_v0  ;;  %v3947_v1 = vpop.f32.mrf.mxu0  ;;  %v3988_v26 = vpop.f32.mrf.mxu1  ;;  %s4265_s28 = sshll.u32 %s5708_s27, 4  ;;  %s4266_s28 = int_to_ptr.vmem [resolvable:$true] %s4265_s28 }
 0x443   :  { %v3987_v27 = vadd.f32 %v3986_v23, %v3946_v25  ;;  %s5662_s11 = scalar_lea.vmem %s4266_s28, 128  ;;  %p5667_p6 = scmp.lt.s32.totalorder %s4266_s28, %s4266_s28 }
 0x444   :  { %v4155_v54 = vsub.f32 0.0, %v3985_v24  ;;  %v3948_v55 = vpop.f32.mrf.mxu0  ;;  %v3989_v28 = vpop.f32.mrf.mxu1  ;;  %p5663_p5 = scmp.ne.s32.totalorder %s4266_s28, %s5662_s11  ;;  %p5668_p7 = scmp.lt.s32.totalorder %s5662_s11, %s5662_s11 }
 0x445   :  { %v4156_v30 = vsub.f32 0.0, %v3987_v27 }
 0x446   :  { %v4164_v29 = vmul.f32 1.442695, %v4155_v54  ;;  %p5669_p8 = por %p5668_p7, %p5667_p6 }
 0x447   :  { %v4166_v9 = vmul.f32 1.442695, %v4156_v30 }
 0x448   :  { %5622 = vpow2.f32 %v4164_v29  ;;  %p5670_p9 = pnand %p5669_p8, %p5663_p5 }
 0x449   :  { %5624 = vpow2.f32 %v4166_v9 }
 0x44a   :  { %5673 = shalt.err (!%p5670_p9)
}
 0x44b   :  { %4268 = dma.vmem_to_hbm [thread:$0]  %s4266_s28, 128, %s7478_s12, [#allocation5]   ;;  %v2658_v39 = vsub.s32 4, %v6608_v38  ;;  %v2662_v41 = vsub.s32 5, %v6608_v38  ;;  %v2666_v4 = vsub.s32 6, %v6608_v38  ;;  %vm4234_vm2 = vcmask 125952  }
 0x44c   :  { %s5709_s12 = smov [#allocation2]  }
 0x44d   :  { %v2659_v42 = vrot.slane %v7441_v44, %v2658_v39  ;;  %v2663_v43 = vrot.slane %v7441_v44, %v2662_v41  ;;  %v2667_v7 = vrot.slane %v7441_v44, %v2666_v4  ;;  %s4245_s2 = sshll.u32 %s5709_s12, 4  ;;  %s4246_s2 = int_to_ptr.vmem [resolvable:$true] %s4245_s2 }
 0x44e   :  { %s5682_s13 = scalar_lea.vmem %s4246_s2, 448  ;;  %p5687_p11 = scmp.lt.s32.totalorder %s4246_s2, %s4246_s2 }
 0x44f   :  { %p5683_p10 = scmp.ne.s32.totalorder %s4246_s2, %s5682_s13  ;;  %p5688_p12 = scmp.lt.s32.totalorder %s5682_s13, %s5682_s13 }
 0x451   :  { %p5689_p13 = por %p5688_p12, %p5687_p11 }
 0x453   :  { %p5690_p0 = pnand %p5689_p13, %p5683_p10 }
 0x455   :  { %v5623_v31 = vpop.eup %5622 }
 0x456   :  { %v4176_v32 = vadd.f32 1.0, %v5623_v31  ;;  %v5625_v52 = vpop.eup %5624 }
 0x457   :  { %v4177_v19 = vadd.f32 1.0, %v5625_v52 }
 0x458   :  { %5626 = vrcp.f32 %v4176_v32 }
 0x459   :  { %5628 = vrcp.f32 %v4177_v19 }
 0x465   :  { %v5627_v20 = vpop.eup %5626 }
 0x466   :  { %v4190_v33 = vmax.f32 %v5627_v20, 0.0  ;;  %v5629_v34 = vpop.eup %5628 }
 0x467   :  { %v4191_v35 = vmax.f32 %v5629_v34, 0.0 }
 0x468   :  { %v4197_v8 = vmin.f32 %v4190_v33, 1.0 }
 0x469   :  { %v4198_v16 = vmin.f32 %v4191_v35, 1.0 }
 0x46b   :  { %v4803_v37 = vpack.c.bf16 %v4198_v16, %v4197_v8 }
 0x46d   :  { %4232 = vst [vmem:[#allocation2 + $0x8] sm:$0xff] %v4803_v37 }
 0x47e   :  { %v4025_v45 = vpop.f32.mrf.mxu0 }
 0x47f   :  { %v4026_v46 = vadd.f32 %v4025_v45, %v2659_v42  ;;  %v4066_v47 = vpop.f32.mrf.mxu1 }
 0x480   :  { %v4027_v48 = vpop.f32.mrf.mxu0 }
 0x481   :  { %v4067_v49 = vadd.f32 %v4066_v47, %v4026_v46  ;;  %v4028_v50 = vadd.f32 %v4027_v48, %v2663_v43  ;;  %v4068_v51 = vpop.f32.mrf.mxu1 }
 0x482   :  { %v4029_v53 = vpop.f32.mrf.mxu0 }
 0x483   :  { %v4157_v58 = vsub.f32 0.0, %v4067_v49  ;;  %v4069_v56 = vadd.f32 %v4068_v51, %v4028_v50  ;;  %v4070_v59 = vpop.f32.mrf.mxu1 }
 0x484   :  { %v4030_v57 = vpop.f32.mrf.mxu0 }
 0x485   :  { %v4168_v60 = vmul.f32 1.442695, %v4157_v58  ;;  %v4158_v61 = vsub.f32 0.0, %v4069_v56  ;;  %v4071_v62 = vpop.f32.mrf.mxu1 }
 0x487   :  { %5630 = vpow2.f32 %v4168_v60  ;;  %v4170_v63 = vmul.f32 1.442695, %v4158_v61 }
 0x489   :  { %5632 = vpow2.f32 %v4170_v63 }
 0x494   :  { %v5631_v2 = vpop.eup %5630 }
 0x495   :  { %v4178_v36 = vadd.f32 1.0, %v5631_v2 }
 0x496   :  { %v5633_v3 = vpop.eup %5632 }
 0x497   :  { %5634 = vrcp.f32 %v4178_v36  ;;  %v4179_v40 = vadd.f32 1.0, %v5633_v3 }
 0x499   :  { %5636 = vrcp.f32 %v4179_v40 }
 0x49e   :  { %v4822_v5 = vpop.f32.mrf.mxu0 }
 0x49f   :  { %v4844_v6 = vpop.f32.mrf.mxu1 }
 0x4a0   :  { %v4823_v10 = vpop.f32.mrf.mxu0 }
 0x4a1   :  { %v4824_v11 = vadd.f32 %v4823_v10, %v4822_v5  ;;  %v4845_v12 = vpop.f32.mrf.mxu1 }
 0x4a2   :  { %v4825_v13 = vpop.f32.mrf.mxu0  ;;  %v4846_v15 = vadd.f32 %v4845_v12, %v4844_v6 }
 0x4a3   :  { %v4108_v14 = vadd.f32 %v4824_v11, %v2667_v7  ;;  %v4847_v17 = vpop.f32.mrf.mxu1 }
 0x4a4   :  { %v5635_v18 = vpop.eup %5634  ;;  %v4826_v21 = vpop.f32.mrf.mxu0 }
 0x4a5   :  { %v4148_v0 = vadd.f32 %v4846_v15, %v4108_v14  ;;  %v4848_v22 = vpop.f32.mrf.mxu1  ;;  %v4192_v23 = vmax.f32 %v5635_v18, 0.0 }
 0x4a6   :  { %v5637_v24 = vpop.eup %5636 }
 0x4a7   :  { %v4159_v25 = vsub.f32 0.0, %v4148_v0  ;;  %v4193_v1 = vmax.f32 %v5637_v24, 0.0  ;;  %v4199_v26 = vmin.f32 %v4192_v23, 1.0 }
 0x4a9   :  { %v4172_v38 = vmul.f32 1.442695, %v4159_v25  ;;  %v4200_v54 = vmin.f32 %v4193_v1, 1.0 }
 0x4ab   :  { %5638 = vpow2.f32 %v4172_v38  ;;  %v4804_v44 = vpack.c.bf16 %v4200_v54, %v4199_v26 }
 0x4ad   :  { %4233 = vst [vmem:[#allocation2 + $0x10] sm:$0xff] %v4804_v44 }
 0x4b8   :  { %v5639_v27 = vpop.eup %5638 }
 0x4b9   :  { %v4180_v55 = vadd.f32 1.0, %v5639_v27 }
 0x4bb   :  { %5640 = vrcp.f32 %v4180_v55 }
 0x4c8   :  { %v5641_v28 = vpop.eup %5640 }
 0x4c9   :  { %v4194_v29 = vmax.f32 %v5641_v28, 0.0 }
 0x4cb   :  { %v4201_v30 = vmin.f32 %v4194_v29, 1.0 }
 0x4cd   :  { %v4805_v9 = vpack.c.bf16 %v4201_v30, %v4201_v30 }
 0x4cf   :  { %4235 = vst.msk [vmem:[#allocation2 + $0x18] sm:$0xf] %vm4234_vm2, %v4805_v9 }
 0x4d0   :  { %5693 = shalt.err (!%p5690_p0)
}
 0x4d1   :  { %4248 = dma.vmem_to_hbm [thread:$0]  %s4246_s2, 448, %s7476_s10, [#allocation3]  }
 0x4d2   :  { %5702 = dma.done.wait [#allocation3], 448  }
 0x4d3   :  { %5703 = vsyncadd [#allocation3], 4294966848 }
 0x4d4   :  { %5704 = dma.done.wait [#allocation5], 256  }
 0x4d5   :  { %5705 = vsyncadd [#allocation5], 4294967040 }
 0x4d6   :  { %4278 = vsyncpa [#allocation3], 1 }
 0x4d7   :  { %4279 = vsyncpa [#allocation5], 1 }

</bundles_post_ra>
